<compile_context>
chip_gen: v7x
topology: tpu7x:2x2x1
jax: 0.10.0
libtpu: 0.0.40
codegen_flags: <defaults>
</compile_context>

<pallas_src>
import functools

import jax
import jax.numpy as jnp
from jax import lax
from jax.experimental import pallas as pl
from jax.experimental.pallas import tpu as pltpu

# ---- static config (mirrors GlanceBlock.__init__ arguments) ----
KD1 = 3                      # TCM dilated conv kernel size
CD1 = 8                      # TCM bottleneck channels
D_FEAT = 16                  # feature channels
P = 2                        # number of SqueezedTCNGroups
DILAS = [1, 2]               # dilations inside each group
FFT_NUM = 16
FREQ = FFT_NUM // 2 + 1      # 9
CI = 2 * FREQ + D_FEAT       # 34
DIL_FLAT = tuple(DILAS) * P  # dilation of every SqueezedTCM in execution order
N_TCM = len(DIL_FLAT)
EPS = 1e-5                   # InstanceNorm eps (PyTorch default)
# TODO(synk): only norm_type='IN', is_causal=True, acti_type='sigmoid' are
# implemented (the GaGNet configuration); 'BN' would need cross-batch running
# statistics and is not translated.


# ----------------------------- Pallas kernel --------------------------------
def glance_kernel(seg_len, t_valid,
                  inpt_ref, seg_ref, segt_ref, win_ref, bin_ref,
                  inw_ref, dw_ref, outw_ref, vp_ref, wlin_ref, blin_ref,
                  gain_ref):
    """One grid step processes a (C, b_tile*seg_len) lane-dense batch slab."""
    f32 = jnp.float32
    n_lane = inpt_ref.shape[-1]            # b_tile * seg_len
    b_tile = segt_ref.shape[0]
    inv_t = f32(1.0 / t_valid)

    # ---- hoisted per-step constants ----
    tmod = lax.broadcasted_iota(jnp.int32, (1, n_lane), 1) % seg_len
    shifts = sorted({(KD1 - 1 - k) * d for d in set(DIL_FLAT)
                     for k in range(KD1 - 1)})
    masks = {s: tmod >= s for s in shifts}     # causal / segment-boundary masks

    if b_tile == 1:
        valid = tmod < t_valid                 # (1, n_lane) valid-frame mask

        def inorm(x, gamma, beta):
            # InstanceNorm1d (affine, biased var) over valid frames only.
            xv = jnp.where(valid, x, 0.0)
            s1 = jnp.sum(xv, axis=-1, keepdims=True)
            s2 = jnp.sum(xv * x, axis=-1, keepdims=True)
            mu = s1 * inv_t
            var = jnp.maximum(s2 * inv_t - mu * mu, 0.0)
            scale = gamma * lax.rsqrt(var + EPS)
            return x * scale + (beta - mu * scale)
    else:
        seg = seg_ref[...]                     # (n_lane, b_tile) valid-masked
        segt = segt_ref[...]                   # (b_tile, n_lane) segment indicator

        def inorm(x, gamma, beta):
            # Per-(batch, channel) statistics via one segment-sum matmul; the
            # per-segment affine is broadcast back via the transposed matrix.
            s1 = jnp.dot(x, seg, preferred_element_type=f32)        # (C, b_tile)
            s2 = jnp.dot(x * x, seg, preferred_element_type=f32)    # (C, b_tile)
            mu = s1 * inv_t
            var = jnp.maximum(s2 * inv_t - mu * mu, 0.0)
            scale = gamma * lax.rsqrt(var + EPS)                    # (C, b_tile)
            off = beta - mu * scale
            return (x * jnp.dot(scale, segt, preferred_element_type=f32)
                    + jnp.dot(off, segt, preferred_element_type=f32))

    def prelu(x, alpha):
        return jnp.where(x >= 0, x, alpha * x)

    # ---- fused in_conv_main + in_conv_gate: one (2*D_FEAT, CI) matmul ----
    x_in = inpt_ref[...].astype(f32)                                 # (CI, N)
    z = jnp.dot(win_ref[...], x_in, preferred_element_type=f32) + bin_ref[...]
    x = z[:D_FEAT] * jax.nn.sigmoid(z[D_FEAT:])                      # (D_FEAT, N)

    # ---- P groups x len(DILAS) SqueezedTCM modules ----
    for n, dil in enumerate(DIL_FLAT):
        resi = x
        h = jnp.dot(inw_ref[n], x, preferred_element_type=f32)       # (CD1, N)

        # d_conv: PReLU -> IN -> causal dilated conv (roll + mask, 3 taps)
        h = prelu(h, vp_ref[0, n])
        h = inorm(h, vp_ref[1, n], vp_ref[2, n])
        y = jnp.dot(dw_ref[n, KD1 - 1], h, preferred_element_type=f32)   # tap s=0
        for k in range(KD1 - 1):
            s = (KD1 - 1 - k) * dil
            tap = jnp.where(masks[s], pltpu.roll(h, s, 1), 0.0)
            y = y + jnp.dot(dw_ref[n, k], tap, preferred_element_type=f32)

        # out_conv: PReLU -> IN -> 1x1 conv, then residual add
        y = prelu(y, vp_ref[3, n])
        y = inorm(y, vp_ref[4, n], vp_ref[5, n])
        x = jnp.dot(outw_ref[n], y, preferred_element_type=f32) + resi

    # ---- linear_g (1x1 conv + sigmoid) ----
    g = jnp.dot(wlin_ref[...], x, preferred_element_type=f32) + blin_ref[...]
    gain_ref[...] = jax.nn.sigmoid(g).astype(gain_ref.dtype)


# ------------------------------- wrapper -------------------------------------
def _vmem_capacity_bytes():
    try:
        cap = getattr(pltpu.get_tpu_info(), "vmem_capacity_bytes", None)
        if cap:
            return int(cap)
    except Exception:
        pass
    return 64 << 20   # conservative fallback (smallest generation, v7x)


def _pack_params(params):
    # Fuse main/gate 1x1 convs into one stacked weight/bias.
    w_in = jnp.concatenate([params["w_main"], params["w_gate"]], axis=0)  # (32,CI)
    b_in = jnp.concatenate([params["b_main"], params["b_gate"]], axis=0)  # (32,1)
    # PyTorch conv weight (N, O, I, K) -> per-tap (N, K, O, I); dw[n, k] pairs
    # with the input shifted left by (KD1-1-k)*dilation.
    dw_koi = jnp.transpose(params["dw_oik"], (0, 3, 1, 2))
    # Pack the 24 tiny per-channel vectors into one array.
    vecp = jnp.stack([params["a1"], params["g1"], params["be1"],
                      params["a2"], params["g2"], params["be2"]], axis=0)
    return w_in, b_in, dw_koi, vecp


def glance_block_pallas(feat_x, pre_x, params, *, b_tile=None,
                        io_dtype=jnp.float32):
    B, _, F, T = pre_x.shape
    assert F == FREQ and feat_x.shape[1] == D_FEAT and feat_x.shape[-1] == T

    seg_len = -(-T // 128) * 128            # T padded to a lane multiple

    # (B,2,F,T) -> (B,2F,T); cat with feat -> (B,CI,T); channel-major layout.
    inpt = jnp.concatenate([feat_x, pre_x.reshape(B, 2 * F, T)], axis=1)
    inpt = jnp.transpose(inpt, (1, 0, 2))                       # (CI, B, T)
    if seg_len != T:
        inpt = jnp.pad(inpt, ((0, 0), (0, 0), (0, seg_len - T)))

    # Generation-aware batch tile (v7x: 64 MiB VMEM, v5e/v6e: 128 MiB).
    vmem_cap = _vmem_capacity_bytes()
    if b_tile is None:
        per_b = 4 * seg_len * (2 * CI + 2 * FREQ + 192)   # rough bytes / element
        b_budget = max(1, (vmem_cap // 2) // per_b)
        b_tile = max(1, min(b_budget, -(-B // 2), 64))    # >=2 steps when B>=2
    num_steps = -(-B // b_tile)
    b_pad = num_steps * b_tile
    if b_pad != B:
        inpt = jnp.pad(inpt, ((0, 0), (0, b_pad - B), (0, 0)))
    inpt_flat = inpt.reshape(CI, b_pad * seg_len).astype(io_dtype)

    # Segment-sum (valid-time masked) and broadcast matrices for InstanceNorm.
    n_lane = b_tile * seg_len
    lane = jnp.arange(n_lane, dtype=jnp.int32)
    segt = (lane[None, :] // seg_len
            == jnp.arange(b_tile, dtype=jnp.int32)[:, None]).astype(jnp.float32)
    validf = ((lane % seg_len) < T).astype(jnp.float32)
    seg = (segt * validf[None, :]).T                            # (n_lane, b_tile)

    w_in, b_in, dw_koi, vecp = _pack_params(params)
    ins = [inpt_flat, seg, segt, w_in, b_in,
           params["inw"], dw_koi, params["outw"], vecp,
           params["w_lin"], params["b_lin"]]

    def full_spec(arr):
        nd = arr.ndim
        return pl.BlockSpec(arr.shape, lambda s, nd=nd: (0,) * nd)

    in_specs = ([pl.BlockSpec((CI, n_lane), lambda s: (0, s))]
                + [full_spec(a) for a in ins[1:]])
    out_spec = pl.BlockSpec((FREQ, n_lane), lambda s: (0, s))

    gain_flat = pl.pallas_call(
        functools.partial(glance_kernel, seg_len, T),
        out_shape=jax.ShapeDtypeStruct((FREQ, b_pad * seg_len), io_dtype),
        grid=(num_steps,),
        in_specs=in_specs,
        out_specs=out_spec,
        compiler_params=pltpu.CompilerParams(
            dimension_semantics=("parallel",),
            vmem_limit_bytes=max(32 << 20, int(0.70 * vmem_cap))),
    )(*ins)

    gain = gain_flat.reshape(FREQ, b_pad, seg_len)
    return jnp.transpose(gain, (1, 0, 2))[:B, :, :T]


# ----------------------- pure-JAX reference (for checking) -------------------
def glance_block_ref(feat_x, pre_x, params):
    B, _, F, T = pre_x.shape
    hp = lax.Precision.HIGHEST
    pre2d = pre_x.reshape(B, 2 * F, T)
    inpt = jnp.concatenate([feat_x, pre2d], axis=1)                 # (B, CI, T)

    def conv1x1(w, x, b=None):
        y = jnp.einsum("oi,bit->bot", w, x, precision=hp)
        return y if b is None else y + b[None]

    def inorm(h, gamma, beta):
        mu = h.mean(-1, keepdims=True)
        var = ((h - mu) ** 2).mean(-1, keepdims=True)
        return (h - mu) / jnp.sqrt(var + EPS) * gamma[None] + beta[None]

    x = conv1x1(params["w_main"], inpt, params["b_main"]) * \
        jax.nn.sigmoid(conv1x1(params["w_gate"], inpt, params["b_gate"]))

    for n, dil in enumerate(DIL_FLAT):
        resi = x
        h = conv1x1(params["inw"][n], x)
        h = jnp.where(h >= 0, h, params["a1"][n][None] * h)
        h = inorm(h, params["g1"][n], params["be1"][n])
        L = (KD1 - 1) * dil
        h = lax.conv_general_dilated(h, params["dw_oik"][n], window_strides=(1,),
                                     padding=[(L, 0)], rhs_dilation=(dil,),
                                     dimension_numbers=("NCH", "OIH", "NCH"),
                                     precision=hp)
        h = jnp.where(h >= 0, h, params["a2"][n][None] * h)
        h = inorm(h, params["g2"][n], params["be2"][n])
        h = conv1x1(params["outw"][n], h)
        x = h + resi

    return jax.nn.sigmoid(conv1x1(params["w_lin"], x, params["b_lin"]))


# ------------------------------ params init ----------------------------------
def init_params(key):
    ks = jax.random.split(key, 13)

    def rn(k, shape, scale=0.1):
        return scale * jax.random.normal(k, shape, dtype=jnp.float32)

    return dict(
        w_main=rn(ks[0], (D_FEAT, CI)),
        b_main=rn(ks[1], (D_FEAT, 1)),
        w_gate=rn(ks[2], (D_FEAT, CI)),
        b_gate=rn(ks[3], (D_FEAT, 1)),
        inw=rn(ks[4], (N_TCM, CD1, D_FEAT)),
        a1=jnp.full((N_TCM, CD1, 1), 0.25, jnp.float32),   # PReLU init
        g1=1.0 + rn(ks[5], (N_TCM, CD1, 1)),               # IN affine weight
        be1=rn(ks[6], (N_TCM, CD1, 1)),                    # IN affine bias
        dw_oik=rn(ks[7], (N_TCM, CD1, CD1, KD1)),          # PyTorch (O, I, K)
        a2=jnp.full((N_TCM, CD1, 1), 0.25, jnp.float32),
        g2=1.0 + rn(ks[8], (N_TCM, CD1, 1)),
        be2=rn(ks[9], (N_TCM, CD1, 1)),
        outw=rn(ks[10], (N_TCM, D_FEAT, CD1)),
        w_lin=rn(ks[11], (FREQ, D_FEAT)),
        b_lin=rn(ks[12], (FREQ, 1)),
    )


if __name__ == "__main__":
    key = jax.random.PRNGKey(0)
    kp, kf, kx = jax.random.split(key, 3)
    params = init_params(kp)

    # --- test A: lane-aligned T, default tiling (b_tile=1 path, 2 grid steps) --
    B, T = 2, 256
    feat_x = jax.random.normal(kf, (B, D_FEAT, T), dtype=jnp.float32)
    pre_x = jax.random.normal(kx, (B, 2, FREQ, T), dtype=jnp.float32)
    ref = glance_block_ref(feat_x, pre_x, params)
    out = jax.block_until_ready(glance_block_pallas(feat_x, pre_x, params))
    assert out.shape == (B, FREQ, T)
    err = float(jnp.max(jnp.abs(out - ref)))
    assert err < 2e-3, f"mismatch vs reference (aligned T): {err}"

    # --- test B: unaligned T + odd batch (T padding, batch padding, and the
    #     segment-matmul InstanceNorm path with b_tile=2) ---------------------
    B2, T2 = 3, 200
    kf2, kx2 = jax.random.split(jax.random.PRNGKey(1), 2)
    feat2 = jax.random.normal(kf2, (B2, D_FEAT, T2), dtype=jnp.float32)
    pre2 = jax.random.normal(kx2, (B2, 2, FREQ, T2), dtype=jnp.float32)
    ref2 = glance_block_ref(feat2, pre2, params)
    out2 = jax.block_until_ready(glance_block_pallas(feat2, pre2, params))
    assert out2.shape == (B2, FREQ, T2)
    err2 = float(jnp.max(jnp.abs(out2 - ref2)))
    assert err2 < 2e-3, f"mismatch vs reference (padded T / odd B): {err2}"

    # --- test C: bf16 I/O (HBM-bound regime), whole batch in one grid step ----
    out3 = jax.block_until_ready(
        glance_block_pallas(feat_x, pre_x, params, b_tile=2,
                            io_dtype=jnp.bfloat16))
    err3 = float(jnp.max(jnp.abs(out3.astype(jnp.float32) - ref)))
    assert err3 < 5e-2, f"mismatch vs reference (bf16 I/O): {err3}"

    print("KERNEL_OK")
</pallas_src>

<mosaic_0001>
module attributes {stable_mosaic.version = 11 : i64} {
  func.func @glance_kernel(%arg0: i32, %arg1: memref<34x256xf32, #tpu.memory_space<vmem>>, %arg2: memref<256x1xf32, #tpu.memory_space<vmem>>, %arg3: memref<1x256xf32, #tpu.memory_space<vmem>>, %arg4: memref<32x34xf32, #tpu.memory_space<vmem>>, %arg5: memref<32x1xf32, #tpu.memory_space<vmem>>, %arg6: memref<4x8x16xf32, #tpu.memory_space<vmem>>, %arg7: memref<4x3x8x8xf32, #tpu.memory_space<vmem>>, %arg8: memref<4x16x8xf32, #tpu.memory_space<vmem>>, %arg9: memref<6x4x8x1xf32, #tpu.memory_space<vmem>>, %arg10: memref<9x16xf32, #tpu.memory_space<vmem>>, %arg11: memref<9x1xf32, #tpu.memory_space<vmem>>, %arg12: memref<9x256xf32, #tpu.memory_space<vmem>>) attributes {dimension_semantics = [#tpu.dimension_semantics<parallel>], iteration_bounds = array<i64: 2>, scalar_prefetch = 0 : i64, scratch_operands = 0 : i64, tpu.core_type = #tpu.core_type<tc>, window_params = [{transform_indices = @transform_0, window_bounds = array<i64: 34, 256>}, {pipeline_mode = #tpu.pipeline_mode<synchronous>, transform_indices = @transform_1, window_bounds = array<i64: 256, 1>}, {pipeline_mode = #tpu.pipeline_mode<synchronous>, transform_indices = @transform_2, window_bounds = array<i64: 1, 256>}, {pipeline_mode = #tpu.pipeline_mode<synchronous>, transform_indices = @transform_3, window_bounds = array<i64: 32, 34>}, {pipeline_mode = #tpu.pipeline_mode<synchronous>, transform_indices = @transform_4, window_bounds = array<i64: 32, 1>}, {pipeline_mode = #tpu.pipeline_mode<synchronous>, transform_indices = @transform_5, window_bounds = array<i64: 4, 8, 16>}, {pipeline_mode = #tpu.pipeline_mode<synchronous>, transform_indices = @transform_6, window_bounds = array<i64: 4, 3, 8, 8>}, {pipeline_mode = #tpu.pipeline_mode<synchronous>, transform_indices = @transform_7, window_bounds = array<i64: 4, 16, 8>}, {pipeline_mode = #tpu.pipeline_mode<synchronous>, transform_indices = @transform_8, window_bounds = array<i64: 6, 4, 8, 1>}, {pipeline_mode = #tpu.pipeline_mode<synchronous>, transform_indices = @transform_9, window_bounds = array<i64: 9, 16>}, {pipeline_mode = #tpu.pipeline_mode<synchronous>, transform_indices = @transform_10, window_bounds = array<i64: 9, 1>}, {transform_indices = @transform_11, window_bounds = array<i64: 9, 256>}]} {
    %0 = tpu.iota {dimensions = array<i32: 1>} : vector<1x256xi32>
    %c256_i32 = arith.constant 256 : i32
    %c0_i32 = arith.constant 0 : i32
    %1 = arith.cmpi eq, %c256_i32, %c0_i32 : i32
    %c1_i32 = arith.constant 1 : i32
    %2 = arith.select %1, %c1_i32, %c256_i32 : i32
    %3 = vector.broadcast %2 : i32 to vector<1x256xi32>
    %4 = arith.remsi %0, %3 : vector<1x256xi32>
    %c0_i32_0 = arith.constant 0 : i32
    %5 = vector.broadcast %c0_i32_0 : i32 to vector<1x256xi32>
    %6 = arith.cmpi ne, %4, %5 : vector<1x256xi32>
    %c0_i32_1 = arith.constant 0 : i32
    %7 = vector.broadcast %c0_i32_1 : i32 to vector<1x256xi32>
    %8 = arith.cmpi slt, %4, %7 : vector<1x256xi32>
    %c0_i32_2 = arith.constant 0 : i32
    %9 = arith.cmpi slt, %2, %c0_i32_2 : i32
    %10 = vector.broadcast %9 : i1 to vector<1x256xi1>
    %11 = vector.broadcast %10 : vector<1x256xi1> to vector<1x256xi1>
    %12 = arith.xori %8, %11 : vector<1x256xi1>
    %13 = arith.andi %12, %6 : vector<1x256xi1>
    %14 = vector.broadcast %2 : i32 to vector<1x256xi32>
    %15 = arith.addi %4, %14 : vector<1x256xi32>
    %16 = arith.select %13, %15, %4 : vector<1x256xi1>, vector<1x256xi32>
    %c1_i32_3 = arith.constant 1 : i32
    %17 = vector.broadcast %c1_i32_3 : i32 to vector<1x256xi32>
    %18 = arith.cmpi sge, %16, %17 : vector<1x256xi32>
    %c2_i32 = arith.constant 2 : i32
    %19 = vector.broadcast %c2_i32 : i32 to vector<1x256xi32>
    %20 = arith.cmpi sge, %16, %19 : vector<1x256xi32>
    %c4_i32 = arith.constant 4 : i32
    %21 = vector.broadcast %c4_i32 : i32 to vector<1x256xi32>
    %22 = arith.cmpi sge, %16, %21 : vector<1x256xi32>
    %c256_i32_4 = arith.constant 256 : i32
    %23 = vector.broadcast %c256_i32_4 : i32 to vector<1x256xi32>
    %24 = arith.cmpi slt, %16, %23 : vector<1x256xi32>
    %c0 = arith.constant 0 : index
    %c0_5 = arith.constant 0 : index
    %25 = vector.load %arg1[%c0, %c0_5] : memref<34x256xf32, #tpu.memory_space<vmem>>, vector<34x256xf32>
    %c0_6 = arith.constant 0 : index
    %c0_7 = arith.constant 0 : index
    %26 = vector.load %arg4[%c0_6, %c0_7] : memref<32x34xf32, #tpu.memory_space<vmem>>, vector<32x34xf32>
    %cst = arith.constant dense<0.000000e+00> : vector<32x256xf32>
    %27 = tpu.matmul %26, %25, %cst {dimension_numbers = #tpu.dot_dimension_numbers<[1], [0], [0], [1], [0, 0, 1, 1], [], []>} : vector<32x34xf32>, vector<34x256xf32>, vector<32x256xf32> -> vector<32x256xf32>
    %c0_8 = arith.constant 0 : index
    %c0_9 = arith.constant 0 : index
    %28 = vector.load %arg5[%c0_8, %c0_9] : memref<32x1xf32, #tpu.memory_space<vmem>>, vector<32x1xf32>
    %29 = vector.broadcast %28 : vector<32x1xf32> to vector<32x256xf32>
    %30 = arith.addf %27, %29 : vector<32x256xf32>
    %31 = vector.extract_strided_slice %30 {offsets = [0, 0], sizes = [16, 256], strides = [1, 1]} : vector<32x256xf32> to vector<16x256xf32>
    %32 = vector.extract_strided_slice %30 {offsets = [16, 0], sizes = [16, 256], strides = [1, 1]} : vector<32x256xf32> to vector<16x256xf32>
    %33 = arith.negf %32 : vector<16x256xf32>
    %34 = math.exp %33 : vector<16x256xf32>
    %cst_10 = arith.constant 1.000000e+00 : f32
    %35 = vector.broadcast %cst_10 : f32 to vector<16x256xf32>
    %36 = arith.addf %35, %34 : vector<16x256xf32>
    %37 = arith.divf %35, %36 : vector<16x256xf32>
    %38 = arith.mulf %31, %37 : vector<16x256xf32>
    %c0_11 = arith.constant 0 : index
    %c0_12 = arith.constant 0 : index
    %c0_13 = arith.constant 0 : index
    %39 = vector.load %arg6[%c0_11, %c0_12, %c0_13] : memref<4x8x16xf32, #tpu.memory_space<vmem>>, vector<1x8x16xf32>
    %40 = vector.shape_cast %39 : vector<1x8x16xf32> to vector<8x16xf32>
    %cst_14 = arith.constant dense<0.000000e+00> : vector<8x256xf32>
    %41 = tpu.matmul %40, %38, %cst_14 {dimension_numbers = #tpu.dot_dimension_numbers<[1], [0], [0], [1], [0, 0, 1, 1], [], []>} : vector<8x16xf32>, vector<16x256xf32>, vector<8x256xf32> -> vector<8x256xf32>
    %c0_15 = arith.constant 0 : index
    %c0_16 = arith.constant 0 : index
    %c0_17 = arith.constant 0 : index
    %c0_18 = arith.constant 0 : index
    %42 = vector.load %arg9[%c0_15, %c0_16, %c0_17, %c0_18] : memref<6x4x8x1xf32, #tpu.memory_space<vmem>>, vector<1x1x8x1xf32>
    %43 = vector.shape_cast %42 : vector<1x1x8x1xf32> to vector<8x1xf32>
    %cst_19 = arith.constant 0.000000e+00 : f32
    %44 = vector.broadcast %cst_19 : f32 to vector<8x256xf32>
    %45 = arith.cmpf oge, %41, %44 : vector<8x256xf32>
    %46 = vector.broadcast %43 : vector<8x1xf32> to vector<8x256xf32>
    %47 = arith.mulf %46, %41 : vector<8x256xf32>
    %48 = arith.select %45, %41, %47 : vector<8x256xi1>, vector<8x256xf32>
    %c1 = arith.constant 1 : index
    %c0_20 = arith.constant 0 : index
    %c0_21 = arith.constant 0 : index
    %c0_22 = arith.constant 0 : index
    %49 = vector.load %arg9[%c1, %c0_20, %c0_21, %c0_22] : memref<6x4x8x1xf32, #tpu.memory_space<vmem>>, vector<1x1x8x1xf32>
    %50 = vector.shape_cast %49 : vector<1x1x8x1xf32> to vector<8x1xf32>
    %c2 = arith.constant 2 : index
    %c0_23 = arith.constant 0 : index
    %c0_24 = arith.constant 0 : index
    %c0_25 = arith.constant 0 : index
    %51 = vector.load %arg9[%c2, %c0_23, %c0_24, %c0_25] : memref<6x4x8x1xf32, #tpu.memory_space<vmem>>, vector<1x1x8x1xf32>
    %52 = vector.shape_cast %51 : vector<1x1x8x1xf32> to vector<8x1xf32>
    %cst_26 = arith.constant 0.000000e+00 : f32
    %53 = vector.shape_cast %24 : vector<1x256xi1> to vector<1x256xi1>
    %54 = vector.broadcast %53 : vector<1x256xi1> to vector<8x256xi1>
    %55 = vector.broadcast %cst_26 : f32 to vector<8x256xf32>
    %56 = arith.select %54, %48, %55 : vector<8x256xi1>, vector<8x256xf32>
    %cst_27 = arith.constant dense<0.000000e+00> : vector<8xf32>
    %57 = vector.multi_reduction <add>, %56, %cst_27 [1] : vector<8x256xf32> to vector<8xf32>
    %58 = vector.shape_cast %57 : vector<8xf32> to vector<8x1xf32>
    %59 = arith.mulf %56, %48 : vector<8x256xf32>
    %cst_28 = arith.constant dense<0.000000e+00> : vector<8xf32>
    %60 = vector.multi_reduction <add>, %59, %cst_28 [1] : vector<8x256xf32> to vector<8xf32>
    %61 = vector.shape_cast %60 : vector<8xf32> to vector<8x1xf32>
    %cst_29 = arith.constant 3.906250e-03 : f32
    %62 = vector.broadcast %cst_29 : f32 to vector<8x1xf32>
    %63 = arith.mulf %58, %62 : vector<8x1xf32>
    %cst_30 = arith.constant 3.906250e-03 : f32
    %64 = vector.broadcast %cst_30 : f32 to vector<8x1xf32>
    %65 = arith.mulf %61, %64 : vector<8x1xf32>
    %66 = arith.mulf %63, %63 : vector<8x1xf32>
    %67 = arith.subf %65, %66 : vector<8x1xf32>
    %cst_31 = arith.constant 0.000000e+00 : f32
    %68 = vector.broadcast %cst_31 : f32 to vector<8x1xf32>
    %69 = arith.maximumf %67, %68 : vector<8x1xf32>
    %cst_32 = arith.constant 9.99999974E-6 : f32
    %70 = vector.broadcast %cst_32 : f32 to vector<8x1xf32>
    %71 = arith.addf %69, %70 : vector<8x1xf32>
    %72 = math.rsqrt %71 : vector<8x1xf32>
    %73 = arith.mulf %50, %72 : vector<8x1xf32>
    %74 = vector.broadcast %73 : vector<8x1xf32> to vector<8x256xf32>
    %75 = arith.mulf %48, %74 : vector<8x256xf32>
    %76 = arith.mulf %63, %73 : vector<8x1xf32>
    %77 = arith.subf %52, %76 : vector<8x1xf32>
    %78 = vector.broadcast %77 : vector<8x1xf32> to vector<8x256xf32>
    %79 = arith.addf %75, %78 : vector<8x256xf32>
    %c0_33 = arith.constant 0 : index
    %c2_34 = arith.constant 2 : index
    %c0_35 = arith.constant 0 : index
    %c0_36 = arith.constant 0 : index
    %80 = vector.load %arg7[%c0_33, %c2_34, %c0_35, %c0_36] : memref<4x3x8x8xf32, #tpu.memory_space<vmem>>, vector<1x1x8x8xf32>
    %81 = vector.shape_cast %80 : vector<1x1x8x8xf32> to vector<8x8xf32>
    %cst_37 = arith.constant dense<0.000000e+00> : vector<8x256xf32>
    %82 = tpu.matmul %81, %79, %cst_37 {dimension_numbers = #tpu.dot_dimension_numbers<[1], [0], [0], [1], [0, 0, 1, 1], [], []>} : vector<8x8xf32>, vector<8x256xf32>, vector<8x256xf32> -> vector<8x256xf32>
    %c2_i32_38 = arith.constant 2 : i32
    %83 = tpu.dynamic_rotate %79 by %c2_i32_38 dim 1 : vector<8x256xf32>, i32 -> vector<8x256xf32>
    %cst_39 = arith.constant 0.000000e+00 : f32
    %84 = vector.shape_cast %20 : vector<1x256xi1> to vector<1x256xi1>
    %85 = vector.broadcast %84 : vector<1x256xi1> to vector<8x256xi1>
    %86 = vector.broadcast %cst_39 : f32 to vector<8x256xf32>
    %87 = arith.select %85, %83, %86 : vector<8x256xi1>, vector<8x256xf32>
    %c0_40 = arith.constant 0 : index
    %c0_41 = arith.constant 0 : index
    %c0_42 = arith.constant 0 : index
    %c0_43 = arith.constant 0 : index
    %88 = vector.load %arg7[%c0_40, %c0_41, %c0_42, %c0_43] : memref<4x3x8x8xf32, #tpu.memory_space<vmem>>, vector<1x1x8x8xf32>
    %89 = vector.shape_cast %88 : vector<1x1x8x8xf32> to vector<8x8xf32>
    %cst_44 = arith.constant dense<0.000000e+00> : vector<8x256xf32>
    %90 = tpu.matmul %89, %87, %cst_44 {dimension_numbers = #tpu.dot_dimension_numbers<[1], [0], [0], [1], [0, 0, 1, 1], [], []>} : vector<8x8xf32>, vector<8x256xf32>, vector<8x256xf32> -> vector<8x256xf32>
    %91 = arith.addf %82, %90 : vector<8x256xf32>
    %c1_i32_45 = arith.constant 1 : i32
    %92 = tpu.dynamic_rotate %79 by %c1_i32_45 dim 1 : vector<8x256xf32>, i32 -> vector<8x256xf32>
    %cst_46 = arith.constant 0.000000e+00 : f32
    %93 = vector.shape_cast %18 : vector<1x256xi1> to vector<1x256xi1>
    %94 = vector.broadcast %93 : vector<1x256xi1> to vector<8x256xi1>
    %95 = vector.broadcast %cst_46 : f32 to vector<8x256xf32>
    %96 = arith.select %94, %92, %95 : vector<8x256xi1>, vector<8x256xf32>
    %c0_47 = arith.constant 0 : index
    %c1_48 = arith.constant 1 : index
    %c0_49 = arith.constant 0 : index
    %c0_50 = arith.constant 0 : index
    %97 = vector.load %arg7[%c0_47, %c1_48, %c0_49, %c0_50] : memref<4x3x8x8xf32, #tpu.memory_space<vmem>>, vector<1x1x8x8xf32>
    %98 = vector.shape_cast %97 : vector<1x1x8x8xf32> to vector<8x8xf32>
    %cst_51 = arith.constant dense<0.000000e+00> : vector<8x256xf32>
    %99 = tpu.matmul %98, %96, %cst_51 {dimension_numbers = #tpu.dot_dimension_numbers<[1], [0], [0], [1], [0, 0, 1, 1], [], []>} : vector<8x8xf32>, vector<8x256xf32>, vector<8x256xf32> -> vector<8x256xf32>
    %100 = arith.addf %91, %99 : vector<8x256xf32>
    %c3 = arith.constant 3 : index
    %c0_52 = arith.constant 0 : index
    %c0_53 = arith.constant 0 : index
    %c0_54 = arith.constant 0 : index
    %101 = vector.load %arg9[%c3, %c0_52, %c0_53, %c0_54] : memref<6x4x8x1xf32, #tpu.memory_space<vmem>>, vector<1x1x8x1xf32>
    %102 = vector.shape_cast %101 : vector<1x1x8x1xf32> to vector<8x1xf32>
    %cst_55 = arith.constant 0.000000e+00 : f32
    %103 = vector.broadcast %cst_55 : f32 to vector<8x256xf32>
    %104 = arith.cmpf oge, %100, %103 : vector<8x256xf32>
    %105 = vector.broadcast %102 : vector<8x1xf32> to vector<8x256xf32>
    %106 = arith.mulf %105, %100 : vector<8x256xf32>
    %107 = arith.select %104, %100, %106 : vector<8x256xi1>, vector<8x256xf32>
    %c4 = arith.constant 4 : index
    %c0_56 = arith.constant 0 : index
    %c0_57 = arith.constant 0 : index
    %c0_58 = arith.constant 0 : index
    %108 = vector.load %arg9[%c4, %c0_56, %c0_57, %c0_58] : memref<6x4x8x1xf32, #tpu.memory_space<vmem>>, vector<1x1x8x1xf32>
    %109 = vector.shape_cast %108 : vector<1x1x8x1xf32> to vector<8x1xf32>
    %c5 = arith.constant 5 : index
    %c0_59 = arith.constant 0 : index
    %c0_60 = arith.constant 0 : index
    %c0_61 = arith.constant 0 : index
    %110 = vector.load %arg9[%c5, %c0_59, %c0_60, %c0_61] : memref<6x4x8x1xf32, #tpu.memory_space<vmem>>, vector<1x1x8x1xf32>
    %111 = vector.shape_cast %110 : vector<1x1x8x1xf32> to vector<8x1xf32>
    %cst_62 = arith.constant 0.000000e+00 : f32
    %112 = vector.shape_cast %24 : vector<1x256xi1> to vector<1x256xi1>
    %113 = vector.broadcast %112 : vector<1x256xi1> to vector<8x256xi1>
    %114 = vector.broadcast %cst_62 : f32 to vector<8x256xf32>
    %115 = arith.select %113, %107, %114 : vector<8x256xi1>, vector<8x256xf32>
    %cst_63 = arith.constant dense<0.000000e+00> : vector<8xf32>
    %116 = vector.multi_reduction <add>, %115, %cst_63 [1] : vector<8x256xf32> to vector<8xf32>
    %117 = vector.shape_cast %116 : vector<8xf32> to vector<8x1xf32>
    %118 = arith.mulf %115, %107 : vector<8x256xf32>
    %cst_64 = arith.constant dense<0.000000e+00> : vector<8xf32>
    %119 = vector.multi_reduction <add>, %118, %cst_64 [1] : vector<8x256xf32> to vector<8xf32>
    %120 = vector.shape_cast %119 : vector<8xf32> to vector<8x1xf32>
    %cst_65 = arith.constant 3.906250e-03 : f32
    %121 = vector.broadcast %cst_65 : f32 to vector<8x1xf32>
    %122 = arith.mulf %117, %121 : vector<8x1xf32>
    %cst_66 = arith.constant 3.906250e-03 : f32
    %123 = vector.broadcast %cst_66 : f32 to vector<8x1xf32>
    %124 = arith.mulf %120, %123 : vector<8x1xf32>
    %125 = arith.mulf %122, %122 : vector<8x1xf32>
    %126 = arith.subf %124, %125 : vector<8x1xf32>
    %cst_67 = arith.constant 0.000000e+00 : f32
    %127 = vector.broadcast %cst_67 : f32 to vector<8x1xf32>
    %128 = arith.maximumf %126, %127 : vector<8x1xf32>
    %cst_68 = arith.constant 9.99999974E-6 : f32
    %129 = vector.broadcast %cst_68 : f32 to vector<8x1xf32>
    %130 = arith.addf %128, %129 : vector<8x1xf32>
    %131 = math.rsqrt %130 : vector<8x1xf32>
    %132 = arith.mulf %109, %131 : vector<8x1xf32>
    %133 = vector.broadcast %132 : vector<8x1xf32> to vector<8x256xf32>
    %134 = arith.mulf %107, %133 : vector<8x256xf32>
    %135 = arith.mulf %122, %132 : vector<8x1xf32>
    %136 = arith.subf %111, %135 : vector<8x1xf32>
    %137 = vector.broadcast %136 : vector<8x1xf32> to vector<8x256xf32>
    %138 = arith.addf %134, %137 : vector<8x256xf32>
    %c0_69 = arith.constant 0 : index
    %c0_70 = arith.constant 0 : index
    %c0_71 = arith.constant 0 : index
    %139 = vector.load %arg8[%c0_69, %c0_70, %c0_71] : memref<4x16x8xf32, #tpu.memory_space<vmem>>, vector<1x16x8xf32>
    %140 = vector.shape_cast %139 : vector<1x16x8xf32> to vector<16x8xf32>
    %cst_72 = arith.constant dense<0.000000e+00> : vector<16x256xf32>
    %141 = tpu.matmul %140, %138, %cst_72 {dimension_numbers = #tpu.dot_dimension_numbers<[1], [0], [0], [1], [0, 0, 1, 1], [], []>} : vector<16x8xf32>, vector<8x256xf32>, vector<16x256xf32> -> vector<16x256xf32>
    %142 = arith.addf %141, %38 : vector<16x256xf32>
    %c1_73 = arith.constant 1 : index
    %c0_74 = arith.constant 0 : index
    %c0_75 = arith.constant 0 : index
    %143 = vector.load %arg6[%c1_73, %c0_74, %c0_75] : memref<4x8x16xf32, #tpu.memory_space<vmem>>, vector<1x8x16xf32>
    %144 = vector.shape_cast %143 : vector<1x8x16xf32> to vector<8x16xf32>
    %cst_76 = arith.constant dense<0.000000e+00> : vector<8x256xf32>
    %145 = tpu.matmul %144, %142, %cst_76 {dimension_numbers = #tpu.dot_dimension_numbers<[1], [0], [0], [1], [0, 0, 1, 1], [], []>} : vector<8x16xf32>, vector<16x256xf32>, vector<8x256xf32> -> vector<8x256xf32>
    %c0_77 = arith.constant 0 : index
    %c1_78 = arith.constant 1 : index
    %c0_79 = arith.constant 0 : index
    %c0_80 = arith.constant 0 : index
    %146 = vector.load %arg9[%c0_77, %c1_78, %c0_79, %c0_80] : memref<6x4x8x1xf32, #tpu.memory_space<vmem>>, vector<1x1x8x1xf32>
    %147 = vector.shape_cast %146 : vector<1x1x8x1xf32> to vector<8x1xf32>
    %cst_81 = arith.constant 0.000000e+00 : f32
    %148 = vector.broadcast %cst_81 : f32 to vector<8x256xf32>
    %149 = arith.cmpf oge, %145, %148 : vector<8x256xf32>
    %150 = vector.broadcast %147 : vector<8x1xf32> to vector<8x256xf32>
    %151 = arith.mulf %150, %145 : vector<8x256xf32>
    %152 = arith.select %149, %145, %151 : vector<8x256xi1>, vector<8x256xf32>
    %c1_82 = arith.constant 1 : index
    %c1_83 = arith.constant 1 : index
    %c0_84 = arith.constant 0 : index
    %c0_85 = arith.constant 0 : index
    %153 = vector.load %arg9[%c1_82, %c1_83, %c0_84, %c0_85] : memref<6x4x8x1xf32, #tpu.memory_space<vmem>>, vector<1x1x8x1xf32>
    %154 = vector.shape_cast %153 : vector<1x1x8x1xf32> to vector<8x1xf32>
    %c2_86 = arith.constant 2 : index
    %c1_87 = arith.constant 1 : index
    %c0_88 = arith.constant 0 : index
    %c0_89 = arith.constant 0 : index
    %155 = vector.load %arg9[%c2_86, %c1_87, %c0_88, %c0_89] : memref<6x4x8x1xf32, #tpu.memory_space<vmem>>, vector<1x1x8x1xf32>
    %156 = vector.shape_cast %155 : vector<1x1x8x1xf32> to vector<8x1xf32>
    %cst_90 = arith.constant 0.000000e+00 : f32
    %157 = vector.shape_cast %24 : vector<1x256xi1> to vector<1x256xi1>
    %158 = vector.broadcast %157 : vector<1x256xi1> to vector<8x256xi1>
    %159 = vector.broadcast %cst_90 : f32 to vector<8x256xf32>
    %160 = arith.select %158, %152, %159 : vector<8x256xi1>, vector<8x256xf32>
    %cst_91 = arith.constant dense<0.000000e+00> : vector<8xf32>
    %161 = vector.multi_reduction <add>, %160, %cst_91 [1] : vector<8x256xf32> to vector<8xf32>
    %162 = vector.shape_cast %161 : vector<8xf32> to vector<8x1xf32>
    %163 = arith.mulf %160, %152 : vector<8x256xf32>
    %cst_92 = arith.constant dense<0.000000e+00> : vector<8xf32>
    %164 = vector.multi_reduction <add>, %163, %cst_92 [1] : vector<8x256xf32> to vector<8xf32>
    %165 = vector.shape_cast %164 : vector<8xf32> to vector<8x1xf32>
    %cst_93 = arith.constant 3.906250e-03 : f32
    %166 = vector.broadcast %cst_93 : f32 to vector<8x1xf32>
    %167 = arith.mulf %162, %166 : vector<8x1xf32>
    %cst_94 = arith.constant 3.906250e-03 : f32
    %168 = vector.broadcast %cst_94 : f32 to vector<8x1xf32>
    %169 = arith.mulf %165, %168 : vector<8x1xf32>
    %170 = arith.mulf %167, %167 : vector<8x1xf32>
    %171 = arith.subf %169, %170 : vector<8x1xf32>
    %cst_95 = arith.constant 0.000000e+00 : f32
    %172 = vector.broadcast %cst_95 : f32 to vector<8x1xf32>
    %173 = arith.maximumf %171, %172 : vector<8x1xf32>
    %cst_96 = arith.constant 9.99999974E-6 : f32
    %174 = vector.broadcast %cst_96 : f32 to vector<8x1xf32>
    %175 = arith.addf %173, %174 : vector<8x1xf32>
    %176 = math.rsqrt %175 : vector<8x1xf32>
    %177 = arith.mulf %154, %176 : vector<8x1xf32>
    %178 = vector.broadcast %177 : vector<8x1xf32> to vector<8x256xf32>
    %179 = arith.mulf %152, %178 : vector<8x256xf32>
    %180 = arith.mulf %167, %177 : vector<8x1xf32>
    %181 = arith.subf %156, %180 : vector<8x1xf32>
    %182 = vector.broadcast %181 : vector<8x1xf32> to vector<8x256xf32>
    %183 = arith.addf %179, %182 : vector<8x256xf32>
    %c1_97 = arith.constant 1 : index
    %c2_98 = arith.constant 2 : index
    %c0_99 = arith.constant 0 : index
    %c0_100 = arith.constant 0 : index
    %184 = vector.load %arg7[%c1_97, %c2_98, %c0_99, %c0_100] : memref<4x3x8x8xf32, #tpu.memory_space<vmem>>, vector<1x1x8x8xf32>
    %185 = vector.shape_cast %184 : vector<1x1x8x8xf32> to vector<8x8xf32>
    %cst_101 = arith.constant dense<0.000000e+00> : vector<8x256xf32>
    %186 = tpu.matmul %185, %183, %cst_101 {dimension_numbers = #tpu.dot_dimension_numbers<[1], [0], [0], [1], [0, 0, 1, 1], [], []>} : vector<8x8xf32>, vector<8x256xf32>, vector<8x256xf32> -> vector<8x256xf32>
    %c4_i32_102 = arith.constant 4 : i32
    %187 = tpu.dynamic_rotate %183 by %c4_i32_102 dim 1 : vector<8x256xf32>, i32 -> vector<8x256xf32>
    %cst_103 = arith.constant 0.000000e+00 : f32
    %188 = vector.shape_cast %22 : vector<1x256xi1> to vector<1x256xi1>
    %189 = vector.broadcast %188 : vector<1x256xi1> to vector<8x256xi1>
    %190 = vector.broadcast %cst_103 : f32 to vector<8x256xf32>
    %191 = arith.select %189, %187, %190 : vector<8x256xi1>, vector<8x256xf32>
    %c1_104 = arith.constant 1 : index
    %c0_105 = arith.constant 0 : index
    %c0_106 = arith.constant 0 : index
    %c0_107 = arith.constant 0 : index
    %192 = vector.load %arg7[%c1_104, %c0_105, %c0_106, %c0_107] : memref<4x3x8x8xf32, #tpu.memory_space<vmem>>, vector<1x1x8x8xf32>
    %193 = vector.shape_cast %192 : vector<1x1x8x8xf32> to vector<8x8xf32>
    %cst_108 = arith.constant dense<0.000000e+00> : vector<8x256xf32>
    %194 = tpu.matmul %193, %191, %cst_108 {dimension_numbers = #tpu.dot_dimension_numbers<[1], [0], [0], [1], [0, 0, 1, 1], [], []>} : vector<8x8xf32>, vector<8x256xf32>, vector<8x256xf32> -> vector<8x256xf32>
    %195 = arith.addf %186, %194 : vector<8x256xf32>
    %c2_i32_109 = arith.constant 2 : i32
    %196 = tpu.dynamic_rotate %183 by %c2_i32_109 dim 1 : vector<8x256xf32>, i32 -> vector<8x256xf32>
    %cst_110 = arith.constant 0.000000e+00 : f32
    %197 = vector.shape_cast %20 : vector<1x256xi1> to vector<1x256xi1>
    %198 = vector.broadcast %197 : vector<1x256xi1> to vector<8x256xi1>
    %199 = vector.broadcast %cst_110 : f32 to vector<8x256xf32>
    %200 = arith.select %198, %196, %199 : vector<8x256xi1>, vector<8x256xf32>
    %c1_111 = arith.constant 1 : index
    %c1_112 = arith.constant 1 : index
    %c0_113 = arith.constant 0 : index
    %c0_114 = arith.constant 0 : index
    %201 = vector.load %arg7[%c1_111, %c1_112, %c0_113, %c0_114] : memref<4x3x8x8xf32, #tpu.memory_space<vmem>>, vector<1x1x8x8xf32>
    %202 = vector.shape_cast %201 : vector<1x1x8x8xf32> to vector<8x8xf32>
    %cst_115 = arith.constant dense<0.000000e+00> : vector<8x256xf32>
    %203 = tpu.matmul %202, %200, %cst_115 {dimension_numbers = #tpu.dot_dimension_numbers<[1], [0], [0], [1], [0, 0, 1, 1], [], []>} : vector<8x8xf32>, vector<8x256xf32>, vector<8x256xf32> -> vector<8x256xf32>
    %204 = arith.addf %195, %203 : vector<8x256xf32>
    %c3_116 = arith.constant 3 : index
    %c1_117 = arith.constant 1 : index
    %c0_118 = arith.constant 0 : index
    %c0_119 = arith.constant 0 : index
    %205 = vector.load %arg9[%c3_116, %c1_117, %c0_118, %c0_119] : memref<6x4x8x1xf32, #tpu.memory_space<vmem>>, vector<1x1x8x1xf32>
    %206 = vector.shape_cast %205 : vector<1x1x8x1xf32> to vector<8x1xf32>
    %cst_120 = arith.constant 0.000000e+00 : f32
    %207 = vector.broadcast %cst_120 : f32 to vector<8x256xf32>
    %208 = arith.cmpf oge, %204, %207 : vector<8x256xf32>
    %209 = vector.broadcast %206 : vector<8x1xf32> to vector<8x256xf32>
    %210 = arith.mulf %209, %204 : vector<8x256xf32>
    %211 = arith.select %208, %204, %210 : vector<8x256xi1>, vector<8x256xf32>
    %c4_121 = arith.constant 4 : index
    %c1_122 = arith.constant 1 : index
    %c0_123 = arith.constant 0 : index
    %c0_124 = arith.constant 0 : index
    %212 = vector.load %arg9[%c4_121, %c1_122, %c0_123, %c0_124] : memref<6x4x8x1xf32, #tpu.memory_space<vmem>>, vector<1x1x8x1xf32>
    %213 = vector.shape_cast %212 : vector<1x1x8x1xf32> to vector<8x1xf32>
    %c5_125 = arith.constant 5 : index
    %c1_126 = arith.constant 1 : index
    %c0_127 = arith.constant 0 : index
    %c0_128 = arith.constant 0 : index
    %214 = vector.load %arg9[%c5_125, %c1_126, %c0_127, %c0_128] : memref<6x4x8x1xf32, #tpu.memory_space<vmem>>, vector<1x1x8x1xf32>
    %215 = vector.shape_cast %214 : vector<1x1x8x1xf32> to vector<8x1xf32>
    %cst_129 = arith.constant 0.000000e+00 : f32
    %216 = vector.shape_cast %24 : vector<1x256xi1> to vector<1x256xi1>
    %217 = vector.broadcast %216 : vector<1x256xi1> to vector<8x256xi1>
    %218 = vector.broadcast %cst_129 : f32 to vector<8x256xf32>
    %219 = arith.select %217, %211, %218 : vector<8x256xi1>, vector<8x256xf32>
    %cst_130 = arith.constant dense<0.000000e+00> : vector<8xf32>
    %220 = vector.multi_reduction <add>, %219, %cst_130 [1] : vector<8x256xf32> to vector<8xf32>
    %221 = vector.shape_cast %220 : vector<8xf32> to vector<8x1xf32>
    %222 = arith.mulf %219, %211 : vector<8x256xf32>
    %cst_131 = arith.constant dense<0.000000e+00> : vector<8xf32>
    %223 = vector.multi_reduction <add>, %222, %cst_131 [1] : vector<8x256xf32> to vector<8xf32>
    %224 = vector.shape_cast %223 : vector<8xf32> to vector<8x1xf32>
    %cst_132 = arith.constant 3.906250e-03 : f32
    %225 = vector.broadcast %cst_132 : f32 to vector<8x1xf32>
    %226 = arith.mulf %221, %225 : vector<8x1xf32>
    %cst_133 = arith.constant 3.906250e-03 : f32
    %227 = vector.broadcast %cst_133 : f32 to vector<8x1xf32>
    %228 = arith.mulf %224, %227 : vector<8x1xf32>
    %229 = arith.mulf %226, %226 : vector<8x1xf32>
    %230 = arith.subf %228, %229 : vector<8x1xf32>
    %cst_134 = arith.constant 0.000000e+00 : f32
    %231 = vector.broadcast %cst_134 : f32 to vector<8x1xf32>
    %232 = arith.maximumf %230, %231 : vector<8x1xf32>
    %cst_135 = arith.constant 9.99999974E-6 : f32
    %233 = vector.broadcast %cst_135 : f32 to vector<8x1xf32>
    %234 = arith.addf %232, %233 : vector<8x1xf32>
    %235 = math.rsqrt %234 : vector<8x1xf32>
    %236 = arith.mulf %213, %235 : vector<8x1xf32>
    %237 = vector.broadcast %236 : vector<8x1xf32> to vector<8x256xf32>
    %238 = arith.mulf %211, %237 : vector<8x256xf32>
    %239 = arith.mulf %226, %236 : vector<8x1xf32>
    %240 = arith.subf %215, %239 : vector<8x1xf32>
    %241 = vector.broadcast %240 : vector<8x1xf32> to vector<8x256xf32>
    %242 = arith.addf %238, %241 : vector<8x256xf32>
    %c1_136 = arith.constant 1 : index
    %c0_137 = arith.constant 0 : index
    %c0_138 = arith.constant 0 : index
    %243 = vector.load %arg8[%c1_136, %c0_137, %c0_138] : memref<4x16x8xf32, #tpu.memory_space<vmem>>, vector<1x16x8xf32>
    %244 = vector.shape_cast %243 : vector<1x16x8xf32> to vector<16x8xf32>
    %cst_139 = arith.constant dense<0.000000e+00> : vector<16x256xf32>
    %245 = tpu.matmul %244, %242, %cst_139 {dimension_numbers = #tpu.dot_dimension_numbers<[1], [0], [0], [1], [0, 0, 1, 1], [], []>} : vector<16x8xf32>, vector<8x256xf32>, vector<16x256xf32> -> vector<16x256xf32>
    %246 = arith.addf %245, %142 : vector<16x256xf32>
    %c2_140 = arith.constant 2 : index
    %c0_141 = arith.constant 0 : index
    %c0_142 = arith.constant 0 : index
    %247 = vector.load %arg6[%c2_140, %c0_141, %c0_142] : memref<4x8x16xf32, #tpu.memory_space<vmem>>, vector<1x8x16xf32>
    %248 = vector.shape_cast %247 : vector<1x8x16xf32> to vector<8x16xf32>
    %cst_143 = arith.constant dense<0.000000e+00> : vector<8x256xf32>
    %249 = tpu.matmul %248, %246, %cst_143 {dimension_numbers = #tpu.dot_dimension_numbers<[1], [0], [0], [1], [0, 0, 1, 1], [], []>} : vector<8x16xf32>, vector<16x256xf32>, vector<8x256xf32> -> vector<8x256xf32>
    %c0_144 = arith.constant 0 : index
    %c2_145 = arith.constant 2 : index
    %c0_146 = arith.constant 0 : index
    %c0_147 = arith.constant 0 : index
    %250 = vector.load %arg9[%c0_144, %c2_145, %c0_146, %c0_147] : memref<6x4x8x1xf32, #tpu.memory_space<vmem>>, vector<1x1x8x1xf32>
    %251 = vector.shape_cast %250 : vector<1x1x8x1xf32> to vector<8x1xf32>
    %cst_148 = arith.constant 0.000000e+00 : f32
    %252 = vector.broadcast %cst_148 : f32 to vector<8x256xf32>
    %253 = arith.cmpf oge, %249, %252 : vector<8x256xf32>
    %254 = vector.broadcast %251 : vector<8x1xf32> to vector<8x256xf32>
    %255 = arith.mulf %254, %249 : vector<8x256xf32>
    %256 = arith.select %253, %249, %255 : vector<8x256xi1>, vector<8x256xf32>
    %c1_149 = arith.constant 1 : index
    %c2_150 = arith.constant 2 : index
    %c0_151 = arith.constant 0 : index
    %c0_152 = arith.constant 0 : index
    %257 = vector.load %arg9[%c1_149, %c2_150, %c0_151, %c0_152] : memref<6x4x8x1xf32, #tpu.memory_space<vmem>>, vector<1x1x8x1xf32>
    %258 = vector.shape_cast %257 : vector<1x1x8x1xf32> to vector<8x1xf32>
    %c2_153 = arith.constant 2 : index
    %c2_154 = arith.constant 2 : index
    %c0_155 = arith.constant 0 : index
    %c0_156 = arith.constant 0 : index
    %259 = vector.load %arg9[%c2_153, %c2_154, %c0_155, %c0_156] : memref<6x4x8x1xf32, #tpu.memory_space<vmem>>, vector<1x1x8x1xf32>
    %260 = vector.shape_cast %259 : vector<1x1x8x1xf32> to vector<8x1xf32>
    %cst_157 = arith.constant 0.000000e+00 : f32
    %261 = vector.shape_cast %24 : vector<1x256xi1> to vector<1x256xi1>
    %262 = vector.broadcast %261 : vector<1x256xi1> to vector<8x256xi1>
    %263 = vector.broadcast %cst_157 : f32 to vector<8x256xf32>
    %264 = arith.select %262, %256, %263 : vector<8x256xi1>, vector<8x256xf32>
    %cst_158 = arith.constant dense<0.000000e+00> : vector<8xf32>
    %265 = vector.multi_reduction <add>, %264, %cst_158 [1] : vector<8x256xf32> to vector<8xf32>
    %266 = vector.shape_cast %265 : vector<8xf32> to vector<8x1xf32>
    %267 = arith.mulf %264, %256 : vector<8x256xf32>
    %cst_159 = arith.constant dense<0.000000e+00> : vector<8xf32>
    %268 = vector.multi_reduction <add>, %267, %cst_159 [1] : vector<8x256xf32> to vector<8xf32>
    %269 = vector.shape_cast %268 : vector<8xf32> to vector<8x1xf32>
    %cst_160 = arith.constant 3.906250e-03 : f32
    %270 = vector.broadcast %cst_160 : f32 to vector<8x1xf32>
    %271 = arith.mulf %266, %270 : vector<8x1xf32>
    %cst_161 = arith.constant 3.906250e-03 : f32
    %272 = vector.broadcast %cst_161 : f32 to vector<8x1xf32>
    %273 = arith.mulf %269, %272 : vector<8x1xf32>
    %274 = arith.mulf %271, %271 : vector<8x1xf32>
    %275 = arith.subf %273, %274 : vector<8x1xf32>
    %cst_162 = arith.constant 0.000000e+00 : f32
    %276 = vector.broadcast %cst_162 : f32 to vector<8x1xf32>
    %277 = arith.maximumf %275, %276 : vector<8x1xf32>
    %cst_163 = arith.constant 9.99999974E-6 : f32
    %278 = vector.broadcast %cst_163 : f32 to vector<8x1xf32>
    %279 = arith.addf %277, %278 : vector<8x1xf32>
    %280 = math.rsqrt %279 : vector<8x1xf32>
    %281 = arith.mulf %258, %280 : vector<8x1xf32>
    %282 = vector.broadcast %281 : vector<8x1xf32> to vector<8x256xf32>
    %283 = arith.mulf %256, %282 : vector<8x256xf32>
    %284 = arith.mulf %271, %281 : vector<8x1xf32>
    %285 = arith.subf %260, %284 : vector<8x1xf32>
    %286 = vector.broadcast %285 : vector<8x1xf32> to vector<8x256xf32>
    %287 = arith.addf %283, %286 : vector<8x256xf32>
    %c2_164 = arith.constant 2 : index
    %c2_165 = arith.constant 2 : index
    %c0_166 = arith.constant 0 : index
    %c0_167 = arith.constant 0 : index
    %288 = vector.load %arg7[%c2_164, %c2_165, %c0_166, %c0_167] : memref<4x3x8x8xf32, #tpu.memory_space<vmem>>, vector<1x1x8x8xf32>
    %289 = vector.shape_cast %288 : vector<1x1x8x8xf32> to vector<8x8xf32>
    %cst_168 = arith.constant dense<0.000000e+00> : vector<8x256xf32>
    %290 = tpu.matmul %289, %287, %cst_168 {dimension_numbers = #tpu.dot_dimension_numbers<[1], [0], [0], [1], [0, 0, 1, 1], [], []>} : vector<8x8xf32>, vector<8x256xf32>, vector<8x256xf32> -> vector<8x256xf32>
    %c2_i32_169 = arith.constant 2 : i32
    %291 = tpu.dynamic_rotate %287 by %c2_i32_169 dim 1 : vector<8x256xf32>, i32 -> vector<8x256xf32>
    %cst_170 = arith.constant 0.000000e+00 : f32
    %292 = vector.shape_cast %20 : vector<1x256xi1> to vector<1x256xi1>
    %293 = vector.broadcast %292 : vector<1x256xi1> to vector<8x256xi1>
    %294 = vector.broadcast %cst_170 : f32 to vector<8x256xf32>
    %295 = arith.select %293, %291, %294 : vector<8x256xi1>, vector<8x256xf32>
    %c2_171 = arith.constant 2 : index
    %c0_172 = arith.constant 0 : index
    %c0_173 = arith.constant 0 : index
    %c0_174 = arith.constant 0 : index
    %296 = vector.load %arg7[%c2_171, %c0_172, %c0_173, %c0_174] : memref<4x3x8x8xf32, #tpu.memory_space<vmem>>, vector<1x1x8x8xf32>
    %297 = vector.shape_cast %296 : vector<1x1x8x8xf32> to vector<8x8xf32>
    %cst_175 = arith.constant dense<0.000000e+00> : vector<8x256xf32>
    %298 = tpu.matmul %297, %295, %cst_175 {dimension_numbers = #tpu.dot_dimension_numbers<[1], [0], [0], [1], [0, 0, 1, 1], [], []>} : vector<8x8xf32>, vector<8x256xf32>, vector<8x256xf32> -> vector<8x256xf32>
    %299 = arith.addf %290, %298 : vector<8x256xf32>
    %c1_i32_176 = arith.constant 1 : i32
    %300 = tpu.dynamic_rotate %287 by %c1_i32_176 dim 1 : vector<8x256xf32>, i32 -> vector<8x256xf32>
    %cst_177 = arith.constant 0.000000e+00 : f32
    %301 = vector.shape_cast %18 : vector<1x256xi1> to vector<1x256xi1>
    %302 = vector.broadcast %301 : vector<1x256xi1> to vector<8x256xi1>
    %303 = vector.broadcast %cst_177 : f32 to vector<8x256xf32>
    %304 = arith.select %302, %300, %303 : vector<8x256xi1>, vector<8x256xf32>
    %c2_178 = arith.constant 2 : index
    %c1_179 = arith.constant 1 : index
    %c0_180 = arith.constant 0 : index
    %c0_181 = arith.constant 0 : index
    %305 = vector.load %arg7[%c2_178, %c1_179, %c0_180, %c0_181] : memref<4x3x8x8xf32, #tpu.memory_space<vmem>>, vector<1x1x8x8xf32>
    %306 = vector.shape_cast %305 : vector<1x1x8x8xf32> to vector<8x8xf32>
    %cst_182 = arith.constant dense<0.000000e+00> : vector<8x256xf32>
    %307 = tpu.matmul %306, %304, %cst_182 {dimension_numbers = #tpu.dot_dimension_numbers<[1], [0], [0], [1], [0, 0, 1, 1], [], []>} : vector<8x8xf32>, vector<8x256xf32>, vector<8x256xf32> -> vector<8x256xf32>
    %308 = arith.addf %299, %307 : vector<8x256xf32>
    %c3_183 = arith.constant 3 : index
    %c2_184 = arith.constant 2 : index
    %c0_185 = arith.constant 0 : index
    %c0_186 = arith.constant 0 : index
    %309 = vector.load %arg9[%c3_183, %c2_184, %c0_185, %c0_186] : memref<6x4x8x1xf32, #tpu.memory_space<vmem>>, vector<1x1x8x1xf32>
    %310 = vector.shape_cast %309 : vector<1x1x8x1xf32> to vector<8x1xf32>
    %cst_187 = arith.constant 0.000000e+00 : f32
    %311 = vector.broadcast %cst_187 : f32 to vector<8x256xf32>
    %312 = arith.cmpf oge, %308, %311 : vector<8x256xf32>
    %313 = vector.broadcast %310 : vector<8x1xf32> to vector<8x256xf32>
    %314 = arith.mulf %313, %308 : vector<8x256xf32>
    %315 = arith.select %312, %308, %314 : vector<8x256xi1>, vector<8x256xf32>
    %c4_188 = arith.constant 4 : index
    %c2_189 = arith.constant 2 : index
    %c0_190 = arith.constant 0 : index
    %c0_191 = arith.constant 0 : index
    %316 = vector.load %arg9[%c4_188, %c2_189, %c0_190, %c0_191] : memref<6x4x8x1xf32, #tpu.memory_space<vmem>>, vector<1x1x8x1xf32>
    %317 = vector.shape_cast %316 : vector<1x1x8x1xf32> to vector<8x1xf32>
    %c5_192 = arith.constant 5 : index
    %c2_193 = arith.constant 2 : index
    %c0_194 = arith.constant 0 : index
    %c0_195 = arith.constant 0 : index
    %318 = vector.load %arg9[%c5_192, %c2_193, %c0_194, %c0_195] : memref<6x4x8x1xf32, #tpu.memory_space<vmem>>, vector<1x1x8x1xf32>
    %319 = vector.shape_cast %318 : vector<1x1x8x1xf32> to vector<8x1xf32>
    %cst_196 = arith.constant 0.000000e+00 : f32
    %320 = vector.shape_cast %24 : vector<1x256xi1> to vector<1x256xi1>
    %321 = vector.broadcast %320 : vector<1x256xi1> to vector<8x256xi1>
    %322 = vector.broadcast %cst_196 : f32 to vector<8x256xf32>
    %323 = arith.select %321, %315, %322 : vector<8x256xi1>, vector<8x256xf32>
    %cst_197 = arith.constant dense<0.000000e+00> : vector<8xf32>
    %324 = vector.multi_reduction <add>, %323, %cst_197 [1] : vector<8x256xf32> to vector<8xf32>
    %325 = vector.shape_cast %324 : vector<8xf32> to vector<8x1xf32>
    %326 = arith.mulf %323, %315 : vector<8x256xf32>
    %cst_198 = arith.constant dense<0.000000e+00> : vector<8xf32>
    %327 = vector.multi_reduction <add>, %326, %cst_198 [1] : vector<8x256xf32> to vector<8xf32>
    %328 = vector.shape_cast %327 : vector<8xf32> to vector<8x1xf32>
    %cst_199 = arith.constant 3.906250e-03 : f32
    %329 = vector.broadcast %cst_199 : f32 to vector<8x1xf32>
    %330 = arith.mulf %325, %329 : vector<8x1xf32>
    %cst_200 = arith.constant 3.906250e-03 : f32
    %331 = vector.broadcast %cst_200 : f32 to vector<8x1xf32>
    %332 = arith.mulf %328, %331 : vector<8x1xf32>
    %333 = arith.mulf %330, %330 : vector<8x1xf32>
    %334 = arith.subf %332, %333 : vector<8x1xf32>
    %cst_201 = arith.constant 0.000000e+00 : f32
    %335 = vector.broadcast %cst_201 : f32 to vector<8x1xf32>
    %336 = arith.maximumf %334, %335 : vector<8x1xf32>
    %cst_202 = arith.constant 9.99999974E-6 : f32
    %337 = vector.broadcast %cst_202 : f32 to vector<8x1xf32>
    %338 = arith.addf %336, %337 : vector<8x1xf32>
    %339 = math.rsqrt %338 : vector<8x1xf32>
    %340 = arith.mulf %317, %339 : vector<8x1xf32>
    %341 = vector.broadcast %340 : vector<8x1xf32> to vector<8x256xf32>
    %342 = arith.mulf %315, %341 : vector<8x256xf32>
    %343 = arith.mulf %330, %340 : vector<8x1xf32>
    %344 = arith.subf %319, %343 : vector<8x1xf32>
    %345 = vector.broadcast %344 : vector<8x1xf32> to vector<8x256xf32>
    %346 = arith.addf %342, %345 : vector<8x256xf32>
    %c2_203 = arith.constant 2 : index
    %c0_204 = arith.constant 0 : index
    %c0_205 = arith.constant 0 : index
    %347 = vector.load %arg8[%c2_203, %c0_204, %c0_205] : memref<4x16x8xf32, #tpu.memory_space<vmem>>, vector<1x16x8xf32>
    %348 = vector.shape_cast %347 : vector<1x16x8xf32> to vector<16x8xf32>
    %cst_206 = arith.constant dense<0.000000e+00> : vector<16x256xf32>
    %349 = tpu.matmul %348, %346, %cst_206 {dimension_numbers = #tpu.dot_dimension_numbers<[1], [0], [0], [1], [0, 0, 1, 1], [], []>} : vector<16x8xf32>, vector<8x256xf32>, vector<16x256xf32> -> vector<16x256xf32>
    %350 = arith.addf %349, %246 : vector<16x256xf32>
    %c3_207 = arith.constant 3 : index
    %c0_208 = arith.constant 0 : index
    %c0_209 = arith.constant 0 : index
    %351 = vector.load %arg6[%c3_207, %c0_208, %c0_209] : memref<4x8x16xf32, #tpu.memory_space<vmem>>, vector<1x8x16xf32>
    %352 = vector.shape_cast %351 : vector<1x8x16xf32> to vector<8x16xf32>
    %cst_210 = arith.constant dense<0.000000e+00> : vector<8x256xf32>
    %353 = tpu.matmul %352, %350, %cst_210 {dimension_numbers = #tpu.dot_dimension_numbers<[1], [0], [0], [1], [0, 0, 1, 1], [], []>} : vector<8x16xf32>, vector<16x256xf32>, vector<8x256xf32> -> vector<8x256xf32>
    %c0_211 = arith.constant 0 : index
    %c3_212 = arith.constant 3 : index
    %c0_213 = arith.constant 0 : index
    %c0_214 = arith.constant 0 : index
    %354 = vector.load %arg9[%c0_211, %c3_212, %c0_213, %c0_214] : memref<6x4x8x1xf32, #tpu.memory_space<vmem>>, vector<1x1x8x1xf32>
    %355 = vector.shape_cast %354 : vector<1x1x8x1xf32> to vector<8x1xf32>
    %cst_215 = arith.constant 0.000000e+00 : f32
    %356 = vector.broadcast %cst_215 : f32 to vector<8x256xf32>
    %357 = arith.cmpf oge, %353, %356 : vector<8x256xf32>
    %358 = vector.broadcast %355 : vector<8x1xf32> to vector<8x256xf32>
    %359 = arith.mulf %358, %353 : vector<8x256xf32>
    %360 = arith.select %357, %353, %359 : vector<8x256xi1>, vector<8x256xf32>
    %c1_216 = arith.constant 1 : index
    %c3_217 = arith.constant 3 : index
    %c0_218 = arith.constant 0 : index
    %c0_219 = arith.constant 0 : index
    %361 = vector.load %arg9[%c1_216, %c3_217, %c0_218, %c0_219] : memref<6x4x8x1xf32, #tpu.memory_space<vmem>>, vector<1x1x8x1xf32>
    %362 = vector.shape_cast %361 : vector<1x1x8x1xf32> to vector<8x1xf32>
    %c2_220 = arith.constant 2 : index
    %c3_221 = arith.constant 3 : index
    %c0_222 = arith.constant 0 : index
    %c0_223 = arith.constant 0 : index
    %363 = vector.load %arg9[%c2_220, %c3_221, %c0_222, %c0_223] : memref<6x4x8x1xf32, #tpu.memory_space<vmem>>, vector<1x1x8x1xf32>
    %364 = vector.shape_cast %363 : vector<1x1x8x1xf32> to vector<8x1xf32>
    %cst_224 = arith.constant 0.000000e+00 : f32
    %365 = vector.shape_cast %24 : vector<1x256xi1> to vector<1x256xi1>
    %366 = vector.broadcast %365 : vector<1x256xi1> to vector<8x256xi1>
    %367 = vector.broadcast %cst_224 : f32 to vector<8x256xf32>
    %368 = arith.select %366, %360, %367 : vector<8x256xi1>, vector<8x256xf32>
    %cst_225 = arith.constant dense<0.000000e+00> : vector<8xf32>
    %369 = vector.multi_reduction <add>, %368, %cst_225 [1] : vector<8x256xf32> to vector<8xf32>
    %370 = vector.shape_cast %369 : vector<8xf32> to vector<8x1xf32>
    %371 = arith.mulf %368, %360 : vector<8x256xf32>
    %cst_226 = arith.constant dense<0.000000e+00> : vector<8xf32>
    %372 = vector.multi_reduction <add>, %371, %cst_226 [1] : vector<8x256xf32> to vector<8xf32>
    %373 = vector.shape_cast %372 : vector<8xf32> to vector<8x1xf32>
    %cst_227 = arith.constant 3.906250e-03 : f32
    %374 = vector.broadcast %cst_227 : f32 to vector<8x1xf32>
    %375 = arith.mulf %370, %374 : vector<8x1xf32>
    %cst_228 = arith.constant 3.906250e-03 : f32
    %376 = vector.broadcast %cst_228 : f32 to vector<8x1xf32>
    %377 = arith.mulf %373, %376 : vector<8x1xf32>
    %378 = arith.mulf %375, %375 : vector<8x1xf32>
    %379 = arith.subf %377, %378 : vector<8x1xf32>
    %cst_229 = arith.constant 0.000000e+00 : f32
    %380 = vector.broadcast %cst_229 : f32 to vector<8x1xf32>
    %381 = arith.maximumf %379, %380 : vector<8x1xf32>
    %cst_230 = arith.constant 9.99999974E-6 : f32
    %382 = vector.broadcast %cst_230 : f32 to vector<8x1xf32>
    %383 = arith.addf %381, %382 : vector<8x1xf32>
    %384 = math.rsqrt %383 : vector<8x1xf32>
    %385 = arith.mulf %362, %384 : vector<8x1xf32>
    %386 = vector.broadcast %385 : vector<8x1xf32> to vector<8x256xf32>
    %387 = arith.mulf %360, %386 : vector<8x256xf32>
    %388 = arith.mulf %375, %385 : vector<8x1xf32>
    %389 = arith.subf %364, %388 : vector<8x1xf32>
    %390 = vector.broadcast %389 : vector<8x1xf32> to vector<8x256xf32>
    %391 = arith.addf %387, %390 : vector<8x256xf32>
    %c3_231 = arith.constant 3 : index
    %c2_232 = arith.constant 2 : index
    %c0_233 = arith.constant 0 : index
    %c0_234 = arith.constant 0 : index
    %392 = vector.load %arg7[%c3_231, %c2_232, %c0_233, %c0_234] : memref<4x3x8x8xf32, #tpu.memory_space<vmem>>, vector<1x1x8x8xf32>
    %393 = vector.shape_cast %392 : vector<1x1x8x8xf32> to vector<8x8xf32>
    %cst_235 = arith.constant dense<0.000000e+00> : vector<8x256xf32>
    %394 = tpu.matmul %393, %391, %cst_235 {dimension_numbers = #tpu.dot_dimension_numbers<[1], [0], [0], [1], [0, 0, 1, 1], [], []>} : vector<8x8xf32>, vector<8x256xf32>, vector<8x256xf32> -> vector<8x256xf32>
    %c4_i32_236 = arith.constant 4 : i32
    %395 = tpu.dynamic_rotate %391 by %c4_i32_236 dim 1 : vector<8x256xf32>, i32 -> vector<8x256xf32>
    %cst_237 = arith.constant 0.000000e+00 : f32
    %396 = vector.shape_cast %22 : vector<1x256xi1> to vector<1x256xi1>
    %397 = vector.broadcast %396 : vector<1x256xi1> to vector<8x256xi1>
    %398 = vector.broadcast %cst_237 : f32 to vector<8x256xf32>
    %399 = arith.select %397, %395, %398 : vector<8x256xi1>, vector<8x256xf32>
    %c3_238 = arith.constant 3 : index
    %c0_239 = arith.constant 0 : index
    %c0_240 = arith.constant 0 : index
    %c0_241 = arith.constant 0 : index
    %400 = vector.load %arg7[%c3_238, %c0_239, %c0_240, %c0_241] : memref<4x3x8x8xf32, #tpu.memory_space<vmem>>, vector<1x1x8x8xf32>
    %401 = vector.shape_cast %400 : vector<1x1x8x8xf32> to vector<8x8xf32>
    %cst_242 = arith.constant dense<0.000000e+00> : vector<8x256xf32>
    %402 = tpu.matmul %401, %399, %cst_242 {dimension_numbers = #tpu.dot_dimension_numbers<[1], [0], [0], [1], [0, 0, 1, 1], [], []>} : vector<8x8xf32>, vector<8x256xf32>, vector<8x256xf32> -> vector<8x256xf32>
    %403 = arith.addf %394, %402 : vector<8x256xf32>
    %c2_i32_243 = arith.constant 2 : i32
    %404 = tpu.dynamic_rotate %391 by %c2_i32_243 dim 1 : vector<8x256xf32>, i32 -> vector<8x256xf32>
    %cst_244 = arith.constant 0.000000e+00 : f32
    %405 = vector.shape_cast %20 : vector<1x256xi1> to vector<1x256xi1>
    %406 = vector.broadcast %405 : vector<1x256xi1> to vector<8x256xi1>
    %407 = vector.broadcast %cst_244 : f32 to vector<8x256xf32>
    %408 = arith.select %406, %404, %407 : vector<8x256xi1>, vector<8x256xf32>
    %c3_245 = arith.constant 3 : index
    %c1_246 = arith.constant 1 : index
    %c0_247 = arith.constant 0 : index
    %c0_248 = arith.constant 0 : index
    %409 = vector.load %arg7[%c3_245, %c1_246, %c0_247, %c0_248] : memref<4x3x8x8xf32, #tpu.memory_space<vmem>>, vector<1x1x8x8xf32>
    %410 = vector.shape_cast %409 : vector<1x1x8x8xf32> to vector<8x8xf32>
    %cst_249 = arith.constant dense<0.000000e+00> : vector<8x256xf32>
    %411 = tpu.matmul %410, %408, %cst_249 {dimension_numbers = #tpu.dot_dimension_numbers<[1], [0], [0], [1], [0, 0, 1, 1], [], []>} : vector<8x8xf32>, vector<8x256xf32>, vector<8x256xf32> -> vector<8x256xf32>
    %412 = arith.addf %403, %411 : vector<8x256xf32>
    %c3_250 = arith.constant 3 : index
    %c3_251 = arith.constant 3 : index
    %c0_252 = arith.constant 0 : index
    %c0_253 = arith.constant 0 : index
    %413 = vector.load %arg9[%c3_250, %c3_251, %c0_252, %c0_253] : memref<6x4x8x1xf32, #tpu.memory_space<vmem>>, vector<1x1x8x1xf32>
    %414 = vector.shape_cast %413 : vector<1x1x8x1xf32> to vector<8x1xf32>
    %cst_254 = arith.constant 0.000000e+00 : f32
    %415 = vector.broadcast %cst_254 : f32 to vector<8x256xf32>
    %416 = arith.cmpf oge, %412, %415 : vector<8x256xf32>
    %417 = vector.broadcast %414 : vector<8x1xf32> to vector<8x256xf32>
    %418 = arith.mulf %417, %412 : vector<8x256xf32>
    %419 = arith.select %416, %412, %418 : vector<8x256xi1>, vector<8x256xf32>
    %c4_255 = arith.constant 4 : index
    %c3_256 = arith.constant 3 : index
    %c0_257 = arith.constant 0 : index
    %c0_258 = arith.constant 0 : index
    %420 = vector.load %arg9[%c4_255, %c3_256, %c0_257, %c0_258] : memref<6x4x8x1xf32, #tpu.memory_space<vmem>>, vector<1x1x8x1xf32>
    %421 = vector.shape_cast %420 : vector<1x1x8x1xf32> to vector<8x1xf32>
    %c5_259 = arith.constant 5 : index
    %c3_260 = arith.constant 3 : index
    %c0_261 = arith.constant 0 : index
    %c0_262 = arith.constant 0 : index
    %422 = vector.load %arg9[%c5_259, %c3_260, %c0_261, %c0_262] : memref<6x4x8x1xf32, #tpu.memory_space<vmem>>, vector<1x1x8x1xf32>
    %423 = vector.shape_cast %422 : vector<1x1x8x1xf32> to vector<8x1xf32>
    %cst_263 = arith.constant 0.000000e+00 : f32
    %424 = vector.shape_cast %24 : vector<1x256xi1> to vector<1x256xi1>
    %425 = vector.broadcast %424 : vector<1x256xi1> to vector<8x256xi1>
    %426 = vector.broadcast %cst_263 : f32 to vector<8x256xf32>
    %427 = arith.select %425, %419, %426 : vector<8x256xi1>, vector<8x256xf32>
    %cst_264 = arith.constant dense<0.000000e+00> : vector<8xf32>
    %428 = vector.multi_reduction <add>, %427, %cst_264 [1] : vector<8x256xf32> to vector<8xf32>
    %429 = vector.shape_cast %428 : vector<8xf32> to vector<8x1xf32>
    %430 = arith.mulf %427, %419 : vector<8x256xf32>
    %cst_265 = arith.constant dense<0.000000e+00> : vector<8xf32>
    %431 = vector.multi_reduction <add>, %430, %cst_265 [1] : vector<8x256xf32> to vector<8xf32>
    %432 = vector.shape_cast %431 : vector<8xf32> to vector<8x1xf32>
    %cst_266 = arith.constant 3.906250e-03 : f32
    %433 = vector.broadcast %cst_266 : f32 to vector<8x1xf32>
    %434 = arith.mulf %429, %433 : vector<8x1xf32>
    %cst_267 = arith.constant 3.906250e-03 : f32
    %435 = vector.broadcast %cst_267 : f32 to vector<8x1xf32>
    %436 = arith.mulf %432, %435 : vector<8x1xf32>
    %437 = arith.mulf %434, %434 : vector<8x1xf32>
    %438 = arith.subf %436, %437 : vector<8x1xf32>
    %cst_268 = arith.constant 0.000000e+00 : f32
    %439 = vector.broadcast %cst_268 : f32 to vector<8x1xf32>
    %440 = arith.maximumf %438, %439 : vector<8x1xf32>
    %cst_269 = arith.constant 9.99999974E-6 : f32
    %441 = vector.broadcast %cst_269 : f32 to vector<8x1xf32>
    %442 = arith.addf %440, %441 : vector<8x1xf32>
    %443 = math.rsqrt %442 : vector<8x1xf32>
    %444 = arith.mulf %421, %443 : vector<8x1xf32>
    %445 = vector.broadcast %444 : vector<8x1xf32> to vector<8x256xf32>
    %446 = arith.mulf %419, %445 : vector<8x256xf32>
    %447 = arith.mulf %434, %444 : vector<8x1xf32>
    %448 = arith.subf %423, %447 : vector<8x1xf32>
    %449 = vector.broadcast %448 : vector<8x1xf32> to vector<8x256xf32>
    %450 = arith.addf %446, %449 : vector<8x256xf32>
    %c3_270 = arith.constant 3 : index
    %c0_271 = arith.constant 0 : index
    %c0_272 = arith.constant 0 : index
    %451 = vector.load %arg8[%c3_270, %c0_271, %c0_272] : memref<4x16x8xf32, #tpu.memory_space<vmem>>, vector<1x16x8xf32>
    %452 = vector.shape_cast %451 : vector<1x16x8xf32> to vector<16x8xf32>
    %cst_273 = arith.constant dense<0.000000e+00> : vector<16x256xf32>
    %453 = tpu.matmul %452, %450, %cst_273 {dimension_numbers = #tpu.dot_dimension_numbers<[1], [0], [0], [1], [0, 0, 1, 1], [], []>} : vector<16x8xf32>, vector<8x256xf32>, vector<16x256xf32> -> vector<16x256xf32>
    %454 = arith.addf %453, %350 : vector<16x256xf32>
    %c0_274 = arith.constant 0 : index
    %c0_275 = arith.constant 0 : index
    %455 = vector.load %arg10[%c0_274, %c0_275] : memref<9x16xf32, #tpu.memory_space<vmem>>, vector<9x16xf32>
    %cst_276 = arith.constant dense<0.000000e+00> : vector<9x256xf32>
    %456 = tpu.matmul %455, %454, %cst_276 {dimension_numbers = #tpu.dot_dimension_numbers<[1], [0], [0], [1], [0, 0, 1, 1], [], []>} : vector<9x16xf32>, vector<16x256xf32>, vector<9x256xf32> -> vector<9x256xf32>
    %c0_277 = arith.constant 0 : index
    %c0_278 = arith.constant 0 : index
    %457 = vector.load %arg11[%c0_277, %c0_278] : memref<9x1xf32, #tpu.memory_space<vmem>>, vector<9x1xf32>
    %458 = vector.broadcast %457 : vector<9x1xf32> to vector<9x256xf32>
    %459 = arith.addf %456, %458 : vector<9x256xf32>
    %460 = arith.negf %459 : vector<9x256xf32>
    %461 = math.exp %460 : vector<9x256xf32>
    %cst_279 = arith.constant 1.000000e+00 : f32
    %462 = vector.broadcast %cst_279 : f32 to vector<9x256xf32>
    %463 = arith.addf %462, %461 : vector<9x256xf32>
    %464 = arith.divf %462, %463 : vector<9x256xf32>
    %c0_280 = arith.constant 0 : index
    %c0_281 = arith.constant 0 : index
    %465 = vector.load %arg12[%c0_280, %c0_281] : memref<9x256xf32, #tpu.memory_space<vmem>>, vector<9x256xf32>
    tpu.vector_store %arg12[%c0_280, %c0_281], %464 {strides = array<i32>} : memref<9x256xf32, #tpu.memory_space<vmem>>, vector<9x256xf32>,
    return
  }
  func.func @transform_0(%arg0: i32) -> (i32, i32) {
    %c0_i32 = arith.constant 0 : i32
    %c0_i32_0 = arith.constant 0 : i32
    return %c0_i32, %arg0 : i32, i32
  }
  func.func @transform_1(%arg0: i32) -> (i32, i32) {
    %c0_i32 = arith.constant 0 : i32
    %c0_i32_0 = arith.constant 0 : i32
    %c0_i32_1 = arith.constant 0 : i32
    return %c0_i32, %c0_i32_0 : i32, i32
  }
  func.func @transform_2(%arg0: i32) -> (i32, i32) {
    %c0_i32 = arith.constant 0 : i32
    %c0_i32_0 = arith.constant 0 : i32
    %c0_i32_1 = arith.constant 0 : i32
    return %c0_i32, %c0_i32_0 : i32, i32
  }
  func.func @transform_3(%arg0: i32) -> (i32, i32) {
    %c0_i32 = arith.constant 0 : i32
    %c0_i32_0 = arith.constant 0 : i32
    %c0_i32_1 = arith.constant 0 : i32
    return %c0_i32, %c0_i32_0 : i32, i32
  }
  func.func @transform_4(%arg0: i32) -> (i32, i32) {
    %c0_i32 = arith.constant 0 : i32
    %c0_i32_0 = arith.constant 0 : i32
    %c0_i32_1 = arith.constant 0 : i32
    return %c0_i32, %c0_i32_0 : i32, i32
  }
  func.func @transform_5(%arg0: i32) -> (i32, i32, i32) {
    %c0_i32 = arith.constant 0 : i32
    %c0_i32_0 = arith.constant 0 : i32
    %c0_i32_1 = arith.constant 0 : i32
    %c0_i32_2 = arith.constant 0 : i32
    return %c0_i32, %c0_i32_0, %c0_i32_1 : i32, i32, i32
  }
  func.func @transform_6(%arg0: i32) -> (i32, i32, i32, i32) {
    %c0_i32 = arith.constant 0 : i32
    %c0_i32_0 = arith.constant 0 : i32
    %c0_i32_1 = arith.constant 0 : i32
    %c0_i32_2 = arith.constant 0 : i32
    %c0_i32_3 = arith.constant 0 : i32
    return %c0_i32, %c0_i32_0, %c0_i32_1, %c0_i32_2 : i32, i32, i32, i32
  }
  func.func @transform_7(%arg0: i32) -> (i32, i32, i32) {
    %c0_i32 = arith.constant 0 : i32
    %c0_i32_0 = arith.constant 0 : i32
    %c0_i32_1 = arith.constant 0 : i32
    %c0_i32_2 = arith.constant 0 : i32
    return %c0_i32, %c0_i32_0, %c0_i32_1 : i32, i32, i32
  }
  func.func @transform_8(%arg0: i32) -> (i32, i32, i32, i32) {
    %c0_i32 = arith.constant 0 : i32
    %c0_i32_0 = arith.constant 0 : i32
    %c0_i32_1 = arith.constant 0 : i32
    %c0_i32_2 = arith.constant 0 : i32
    %c0_i32_3 = arith.constant 0 : i32
    return %c0_i32, %c0_i32_0, %c0_i32_1, %c0_i32_2 : i32, i32, i32, i32
  }
  func.func @transform_9(%arg0: i32) -> (i32, i32) {
    %c0_i32 = arith.constant 0 : i32
    %c0_i32_0 = arith.constant 0 : i32
    %c0_i32_1 = arith.constant 0 : i32
    return %c0_i32, %c0_i32_0 : i32, i32
  }
  func.func @transform_10(%arg0: i32) -> (i32, i32) {
    %c0_i32 = arith.constant 0 : i32
    %c0_i32_0 = arith.constant 0 : i32
    %c0_i32_1 = arith.constant 0 : i32
    return %c0_i32, %c0_i32_0 : i32, i32
  }
  func.func @transform_11(%arg0: i32) -> (i32, i32) {
    %c0_i32 = arith.constant 0 : i32
    %c0_i32_0 = arith.constant 0 : i32
    return %c0_i32, %arg0 : i32, i32
  }
}

</mosaic_0001>

<bundles_post_ra>
// kernel: tpu_custom_call.1
= control target key start
LH: loop header
LB: loop body
LE: loop exit
PB: predicated region body
PF: predicated region fallthrough
CT: control target
= control target key end

     0   :  { %16 = vsyncpa [#allocation4], 0  ;;  %s3767_s0 = inlined_call_operand.vmem [shape: f32[34,512], index: 0, kind: input, shape index: {}]   ;;  %s3768_s1 = inlined_call_operand.vmem [shape: f32[256,1], index: 1, kind: input, shape index: {}]   ;;  %s3769_s2 = inlined_call_operand.vmem [shape: f32[1,256], index: 2, kind: input, shape index: {}]   ;;  %s3770_s3 = inlined_call_operand.vmem [shape: f32[32,34], index: 3, kind: input, shape index: {}]   ;;  %s3771_s4 = inlined_call_operand.vmem [shape: f32[32,1], index: 4, kind: input, shape index: {}]   ;;  %s3772_s5 = inlined_call_operand.vmem [shape: f32[4,8,16], index: 5, kind: input, shape index: {}]   ;;  %s3773_s6 = inlined_call_operand.vmem [shape: f32[4,3,8,8], index: 6, kind: input, shape index: {}]   ;;  %s3774_s7 = inlined_call_operand.vmem [shape: f32[4,16,8], index: 7, kind: input, shape index: {}]   ;;  %s3775_s8 = inlined_call_operand.vmem [shape: f32[6,4,8,1], index: 8, kind: input, shape index: {}]   ;;  %s3776_s9 = inlined_call_operand.vmem [shape: f32[9,16], index: 9, kind: input, shape index: {}]   ;;  %s3777_s10 = inlined_call_operand.vmem [shape: f32[9,1], index: 10, kind: input, shape index: {}]   ;;  %s3778_s11 = inlined_call_operand.hbm [shape: f32[9,512], index: 11, kind: output, shape index: {}]  }
   0x1   :  { %18 = vsyncpa [#allocation4 + $0x1], 0  ;;  %s3280_s15 = smov 0   ;;  %s3282_s16 = smov 0  }
   0x2   :  { %s3284_s17 = smov 0   ;;  %s3286_s18 = smov 0  }
   0x3 LB: > { %s2898_s19 = sadd.s32 4294967295, %s3209_s18   ;;  %s2899_s20 = sadd.s32 4294967294, %s3209_s18   ;;  %s3209_s18 = sphi %s3286_s18, %s3784_s18   ;;  %s3205_s17 = sphi %s3284_s17, %s3783_s17   ;;  %s3201_s16 = sphi %s3282_s16, %s3782_s16   ;;  %s3197_s15 = sphi %s3280_s15, %s3781_s15  }
   0x4   : > { %s3303_s21 = sadd.s32 1, %s3209_s18   ;;  %s31_s22 = sadd.s32 1, %s3205_s17 }
   0x5   : > { %s28_s23 = ssub.s32 %s3209_s18, %s3303_s21  ;;  %p38_p0 = scmp.ne.s32.totalorder %s3205_s17, %s3201_s16 }
   0x6   : > { %p29_p1 = scmp.eq.s32.totalorder %s28_s23, 0  ;;  %p39_p2 = scmp.eq.s32.totalorder %s3209_s18, 0 }
   0x7   : > { %p278_p3 = scmp.eq.s32.totalorder %s2898_s19, 1  ;;  %p283_p4 = scmp.ne.s32.totalorder %s3201_s16, %s3197_s15 }
   0x8   : > { %s3316_s24 = scalar_select %p29_p1, %s3205_s17, %s31_s22  }
   0x9   : > { %p40_p5 = por %p39_p2, %p38_p0  ;;  %p3318_p6 = por %p278_p3, %p38_p0 }
   0xa   : > { %p284_p7 = scmp.eq.s32.totalorder %s2899_s20, 1  ;;  %p2901_p9 = scmp.ge.s32.totalorder %s3209_s18, 2 }
   0xc   : > { %p3322_p8 = por %p284_p7, %p283_p4  ;;  %330 = sbr.rel (%p2901_p9) target bundleno = 28 (0x1c), region = 56 }
  0x13   : > { %333 = sbr.rel (!%p40_p5) target bundleno = 28 (0x1c), region = 60  ;;  %s335_s27 = sand.u32 (%p40_p5), 1, %s3205_s17  }
  0x14   : > { %s3002_s28 = sshll.u32 (%p40_p5), %s3209_s18, 4  ;;  %s3048_s1 = smul.u32 (%p40_p5), 80, %s335_s27 }
  0x15   : > { %s340_s30 = scalar_lea.vmem (%p40_p5), %s3767_s0, %s3002_s28 }
  0x16   : > { %v353_v0 = vld [vmem:[%s340_s30] sm:$0xff] (%p40_p5)  ;;  %v355_v1 = vld [vmem:[%s340_s30 + $0x8] sm:$0xff] (%p40_p5)  ;;  %s337_s12 = scalar_lea.vmem (%p40_p5), [#allocation2], %s3048_s1 }
  0x17   : > { %v357_v2 = vld [vmem:[%s340_s30 + $0x20] sm:$0xff] (%p40_p5)  ;;  %v359_v3 = vld [vmem:[%s340_s30 + $0x28] sm:$0xff] (%p40_p5)  ;;  %354 = vst [vmem:[%s337_s12] sm:$0xff] (%p40_p5), %v353_v0  ;;  %356 = vst [vmem:[%s337_s12 + $0x8] sm:$0xff] (%p40_p5), %v355_v1 }
  0x18   : > { %v361_v4 = vld [vmem:[%s340_s30 + $0x40] sm:$0xff] (%p40_p5)  ;;  %v363_v5 = vld [vmem:[%s340_s30 + $0x48] sm:$0xff] (%p40_p5)  ;;  %358 = vst [vmem:[%s337_s12 + $0x10] sm:$0xff] (%p40_p5), %v357_v2  ;;  %360 = vst [vmem:[%s337_s12 + $0x18] sm:$0xff] (%p40_p5), %v359_v3 }
  0x19   : > { %362 = vst [vmem:[%s337_s12 + $0x20] sm:$0xff] (%p40_p5), %v361_v4  ;;  %364 = vst [vmem:[%s337_s12 + $0x28] sm:$0xff] (%p40_p5), %v363_v5  ;;  %v365_v6 = vld [vmem:[%s340_s30 + $0x60] sm:$0xff] (%p40_p5)  ;;  %v367_v7 = vld [vmem:[%s340_s30 + $0x68] sm:$0xff] (%p40_p5) }
  0x1a   : > { %v369_v8 = vld [vmem:[%s340_s30 + $0x80] sm:$0xff]  ;;  %366 = vst [vmem:[%s337_s12 + $0x30] sm:$0xff] %v365_v6  ;;  %368 = vst [vmem:[%s337_s12 + $0x38] sm:$0xff] %v367_v7  ;;  %v371_v9 = vld [vmem:[%s340_s30 + $0x88] sm:$0xff] }
  0x1b   : > { %370 = vst [vmem:[%s337_s12 + $0x40] sm:$0xff] %v369_v8  ;;  %372 = vst [vmem:[%s337_s12 + $0x48] sm:$0xff] %v371_v9 }
  0x1c PF: > { %p2904_p10 = scmp.ge.s32.totalorder %s3209_s18, 1  ;;  %p377_p11 = scmp.lt.s32.totalorder %s3209_s18, 3 }
  0x1e   : > { %p378_p12 = pnand %p2904_p10, %p377_p11 }
  0x1f   : > { %s3337_s13 = sand.u32 (!%p378_p12), 1, %s3201_s16   ;;  %v3211_v10 = vmov (!%p378_p12), 0.0   ;;  %v474_v11 = vld [vmem:[%s3771_s4] sm:$0xff] (!%p378_p12)  ;;  %v3212_v12 = vmov (!%p378_p12), 0   ;;  %v476_v13 = vld [vmem:[%s3771_s4 + $0x10] sm:$0xff] (!%p378_p12)  ;;  %v475_v14 = vld [vmem:[%s3771_s4 + $0x8] sm:$0xff] (!%p378_p12) }
  0x20   : > { %381 = sbr.rel (%p378_p12) target bundleno = 6151 (0x1807), region = 83  ;;  %582 = vmatprep.mubr.f32.mxu0 (!%p378_p12), %v3211_v10  ;;  %704 = vmatprep.mubr.f32.mxu1 (!%p378_p12), %v3211_v10  ;;  %v477_v15 = vld [vmem:[%s3771_s4 + $0x18] sm:$0xff] (!%p378_p12)  ;;  %v711_v28 = vld [vmem:[%s3775_s8] sm:$0xff] (!%p378_p12)  ;;  %vm511_vm0 = vcmask (!%p378_p12), 1041408   ;;  %vm498_vm1 = vcmask (!%p378_p12), 277504   ;;  %v471_v32 = vld [vmem:[%s3770_s3 + $0x8] sm:$0xff] (!%p378_p12) }
  0x21   : > { %s3049_s14 = smul.u32 (!%p378_p12), 80, %s3337_s13  ;;  %3098 = vset.pattern.permute.xlu1 (!%p378_p12), %v3212_v12  ;;  %3097 = vset.pattern.permute.xlu0 (!%p378_p12), %v3212_v12  ;;  %v470_v31 = vld [vmem:[%s3770_s3] sm:$0xff] (!%p378_p12)  ;;  %v472_v33 = vld [vmem:[%s3770_s3 + $0x10] sm:$0xff] (!%p378_p12)  ;;  %v473_v34 = vld [vmem:[%s3770_s3 + $0x18] sm:$0xff] (!%p378_p12)  ;;  %vm636_vm2 = vcmask (!%p378_p12), 130048   ;;  %s3213_s27 = smov (!%p378_p12), 2  }
  0x22   : > { %480 = vperm.xlu1 (!%p378_p12), %3098, %v474_v11   ;;  %490 = vperm.xlu0 (!%p378_p12), %3097, %v476_v13   ;;  %s3214_s28 = smov (!%p378_p12), 1   ;;  %vm781_vm7 = vcmask (!%p378_p12), 64512   ;;  %s2905_s20 = sshll.u32 (!%p378_p12), %s3337_s13, 5 }
  0x23   : > { %s386_s30 = scalar_lea.vmem (!%p378_p12), [#allocation2], %s3049_s14  ;;  %s3215_s14 = smov (!%p378_p12), 4  }
  0x24   : > { %v461_v16 = vld [vmem:[%s386_s30 + $0x8] sm:$0xff] (!%p378_p12)  ;;  %v463_v17 = vld [vmem:[%s386_s30 + $0x18] sm:$0xff] (!%p378_p12)  ;;  %v460_v18 = vld [vmem:[%s386_s30] sm:$0xff] (!%p378_p12)  ;;  %s3003_s22 = sshll.u32 (!%p378_p12), %s2898_s19, 8  ;;  %s2818_s19 = scalar_lea.sflag (!%p378_p12), [#allocation4], %s3337_s13 }
  0x25   : > { %v3004_v19 = vpack.c.bf16 (!%p378_p12), %v463_v17, %v461_v16  ;;  %v462_v20 = vld [vmem:[%s386_s30 + $0x10] sm:$0xff] (!%p378_p12)  ;;  %v465_v21 = vld [vmem:[%s386_s30 + $0x28] sm:$0xff] (!%p378_p12)  ;;  %v467_v22 = vld [vmem:[%s386_s30 + $0x38] sm:$0xff] (!%p378_p12)  ;;  %s3721_s29 = scalar_lea.hbm (!%p378_p12), %s3778_s11, %s3003_s22  ;;  %s3216_s2 = smov (!%p378_p12), [#allocation3]  }
  0x26   : > { %v3006_v23 = vpack.c.bf16 (!%p378_p12), %v462_v20, %v460_v18  ;;  %v3008_v24 = vpack.c.bf16 (!%p378_p12), %v467_v22, %v465_v21  ;;  %v464_v25 = vld [vmem:[%s386_s30 + $0x20] sm:$0xff] (!%p378_p12)  ;;  %v466_v26 = vld [vmem:[%s386_s30 + $0x30] sm:$0xff] (!%p378_p12)  ;;  %485 = vperm.xlu1 (!%p378_p12), %3098, %v475_v14   ;;  %495 = vperm.xlu0 (!%p378_p12), %3097, %v477_v15   ;;  %v469_v29 = vld [vmem:[%s386_s30 + $0x48] sm:$0x3] (!%p378_p12) }
  0x27   : > { %3005 = vmatprep.subr.bf16.mxu0 %v3004_v19  ;;  %v3010_v27 = vpack.c.bf16 %v466_v26, %v464_v25  ;;  %v468_v30 = vld [vmem:[%s386_s30 + $0x40] sm:$0x3]  ;;  %s3151_s30 = sshll.u32 %s3216_s2, 4  ;;  %s3152_s30 = int_to_ptr.vmem [resolvable:$false] %s3151_s30 }
  0x28   : > { %3007 = vmatpush1.bf16.msra.mxu0 %v3006_v23  ;;  %v635_v14 = vld [vmem:[%s3772_s5] sm:$0xff]  ;;  %s3153_s12 = scalar_lea.vmem %s3152_s30, 1024 }
  0x29   : > { %3009 = vmatprep.subr.bf16.mxu0 %v3008_v24 }
  0x2a   : > { %716 = vperm.xlu0 %3097, %v711_v28  }
  0x2c   : > { %3011 = vmatpush1.bf16.msra.mxu0 %v3010_v27 }
  0x2d   : > { %2906 = vmatprep.subr.msk.mxu0 %vm511_vm0, %v469_v29 }
  0x30   : > { %2907 = vmatpush1.msk.msra.mxu0 %vm511_vm0, %v468_v30 }
  0x31   : > { %2908 = vmatmul.mubr.msk.f32.vlgmr.msra.gmra.mrb[0].mxu0 %vm498_vm1, %v470_v31 }
  0x32   : > { %588 = vmatprep.mubr.f32.mxu0 %v3211_v10 }
  0x35   : > { %2909 = vmatmul.mubr.msk.f32.gmra.mrb[2].mxu0 %vm498_vm1, %v471_v32 }
  0x36   : > { %594 = vmatprep.mubr.f32.mxu0 %v3211_v10 }
  0x39   : > { %2910 = vmatmul.mubr.msk.f32.gmra.mrb[4].mxu0 %vm498_vm1, %v472_v33 }
  0x3a   : > { %600 = vmatprep.mubr.f32.mxu0 %v3211_v10 }
  0x3d   : > { %2911 = vmatmul.mubr.msk.f32.gmra.mrb[6].mxu0 %vm498_vm1, %v473_v34  ;;  %v2917_v34 = vld [vmem:[%s3775_s8 + $0x20] sm:$0xff] }
  0x3e   : > { %1659 = vmatprep.mubr.f32.mxu0 %v3211_v10 }
  0xa1   : > { %v491_v39 = vpop.permute.xlu0 %490  ;;  %v481_v61 = vpop.permute.xlu1 %480 }
  0xa5   : > { %v496_v45 = vpop.permute.xlu0 %495  ;;  %v486_v1 = vpop.permute.xlu1 %485 }
  0xa9   : > { %v717_v15 = vpop.permute.xlu0 %716 }
 0x104   : > { %v584_v35 = vpop.f32.mrb[0].mxu0 }
 0x105   : > { %v586_v36 = vpop.f32.mrb[1].mxu0  ;;  %v585_v62 = vadd.f32 %v584_v35, %v481_v61 }
 0x106   : > { %v587_v0 = vadd.f32 %v586_v36, %v481_v61 }
 0x108   : > { %v590_v37 = vpop.f32.mrb[2].mxu0 }
 0x109   : > { %v592_v38 = vpop.f32.mrb[3].mxu0  ;;  %v591_v5 = vadd.f32 %v590_v37, %v486_v1  ;;  %v2918_v37 = vld [vmem:[%s3775_s8 + $0x40] sm:$0xff] }
 0x10a   : > { %v593_v7 = vadd.f32 %v592_v38, %v486_v1 }
 0x10c   : > { %v596_v40 = vpop.f32.mrb[4].mxu0 }
 0x10d   : > { %v597_v41 = vadd.f32 %v596_v40, %v491_v39  ;;  %v598_v42 = vpop.f32.mrb[5].mxu0 }
 0x10e   : > { %v599_v43 = vadd.f32 %v598_v42, %v491_v39 }
 0x10f   : > { %v2912_v44 = vmul.f32 -1.442695, %v597_v41 }
 0x110   : > { %v2913_v46 = vmul.f32 -1.442695, %v599_v43  ;;  %v602_v47 = vpop.f32.mrb[6].mxu0 }
 0x111   : > { %3099 = vpow2.f32 %v2912_v44  ;;  %v603_v48 = vadd.f32 %v602_v47, %v496_v45  ;;  %v604_v49 = vpop.f32.mrb[7].mxu0  ;;  %v425_v47 = vlaneseq }
 0x112   : > { %3101 = vpow2.f32 %v2913_v46  ;;  %v605_v50 = vadd.f32 %v604_v49, %v496_v45  ;;  %v2926_v46 = vld [vmem:[%s3775_s8 + $0x60] sm:$0xff] }
 0x113   : > { %v2914_v51 = vmul.f32 -1.442695, %v603_v48  ;;  %v3403_v48 = vand.u32 127, %v425_v47 }
 0x114   : > { %v2915_v52 = vmul.f32 -1.442695, %v605_v50 }
 0x115   : > { %3103 = vpow2.f32 %v2914_v51  ;;  %v3406_v49 = vand.u32 255, %v3403_v48  ;;  %vm771_vm5 = vcmp.lt.s32.totalorder %v3403_v48, 2  ;;  %vm934_vm8 = vcmp.lt.s32.totalorder %v3403_v48, 1 }
 0x116   : > { %3105 = vpow2.f32 %v2915_v52  ;;  %vm1290_vm14 = vcmp.lt.s32.totalorder %v3403_v48, 4 }
 0x117   : > { %vm454_vm6 = vcmp.ge.s32.totalorder %v3406_v49, 2  ;;  %vm452_vm9 = vcmp.ge.s32.totalorder %v3406_v49, 1  ;;  %vm456_vm15 = vcmp.ge.s32.totalorder %v3406_v49, 4 }
 0x11b   : > { %v3100_v53 = vpop.eup %3099 }
 0x11c   : > { %v3102_v54 = vpop.eup %3101  ;;  %v619_v55 = vadd.f32 1.0, %v3100_v53 }
 0x11d   : > { %v620_v56 = vadd.f32 1.0, %v3102_v54  ;;  %v780_v54 = vld [vmem:[%s3773_s6] sm:$0xff] }
 0x11e   : > { %3107 = vrcp.f32 %v619_v55 }
 0x11f   : > { %v3104_v57 = vpop.eup %3103  ;;  %3109 = vrcp.f32 %v620_v56 }
 0x120   : > { %v3106_v58 = vpop.eup %3105  ;;  %v621_v59 = vadd.f32 1.0, %v3104_v57 }
 0x121   : > { %v622_v60 = vadd.f32 1.0, %v3106_v58  ;;  %v2919_v58 = vld [vmem:[%s3773_s6 + $0x10] sm:$0xff] }
 0x122   : > { %3111 = vrcp.f32 %v621_v59 }
 0x123   : > { %3113 = vrcp.f32 %v622_v60  ;;  %v2923_v60 = vld [vmem:[%s3773_s6 + $0x8] sm:$0xff] }
 0x128   : > { %v3108_v63 = vpop.eup %3107 }
 0x129   : > { %v3110_v2 = vpop.eup %3109  ;;  %v3373_v3 = vmul.f32 %v3108_v63, %v585_v62 }
 0x12a   : > { %v3375_v4 = vmul.f32 %v3110_v2, %v587_v0 }
 0x12c   : > { %v3112_v6 = vpop.eup %3111 }
 0x12d   : > { %v3114_v8 = vpop.eup %3113  ;;  %v3377_v9 = vmul.f32 %v3112_v6, %v591_v5 }
 0x12e   : > { %v3379_v11 = vmul.f32 %v3114_v8, %v593_v7 }
 0x12f   : > { %v3014_v13 = vpack.c.bf16 %v3377_v9, %v3373_v3 }
 0x130   : > { %v3012_v12 = vpack.c.bf16 %v3379_v11, %v3375_v4 }
 0x132   : > { %3013 = vmatprep.subr.bf16.mxu1 %v3012_v12 }
 0x133   : > { %3015 = vmatpush1.bf16.msra.mxu1 %v3014_v13 }
 0x136   : > { %2916 = vmatmul.mubr.msk.f32.vlgmr.msra.gmra.mrb[0].mxu1 %vm636_vm2, %v635_v14 }
 0x137   : > { %849 = vmatprep.mubr.f32.mxu1 %v3211_v10 }
 0x209   : > { %v706_v16 = vpop.f32.mrb[0].mxu1 }
 0x20a   : > { %vm712_vm3 = vcmp.ge.f32.partialorder %v706_v16, 0.0  ;;  %v719_v17 = vmul.f32 %v717_v15, %v706_v16  ;;  %v708_v18 = vpop.f32.mrb[1].mxu1 }
 0x20b   : > { %vm713_vm4 = vcmp.ge.f32.partialorder %v708_v18, 0.0  ;;  %v720_v19 = vmul.f32 %v717_v15, %v708_v18 }
 0x20c   : > { %v721_v20 = vsel %vm712_vm3, %v706_v16, %v719_v17 }
 0x20d   : > { %v722_v21 = vsel %vm713_vm4, %v708_v18, %v720_v19  ;;  %v736_v22 = vmul.f32 %v721_v20, %v721_v20 }
 0x20e   : > { %v733_v23 = vadd.f32 %v722_v21, %v721_v20  ;;  %v737_v24 = vmul.f32 %v722_v21, %v722_v21 }
 0x210   : > { %734 = vadd.xlane.f32.xlu1 %v733_v23  ;;  %v738_v25 = vadd.f32 %v737_v24, %v736_v22  ;;  %v2928_v24 = vld [vmem:[%s3775_s8 + $0xa0] sm:$0xff] }
 0x212   : > { %739 = vadd.xlane.f32.xlu0 %v738_v25 }
 0x29d   : > { %v735_v26 = vpop.xlane.xlu1 %734 }
 0x29e   : > { %v741_v27 = vmul.f32 0.00390625, %v735_v26  ;;  %v2933_v26 = vld [vmem:[%s3775_s8 + $0x8] sm:$0xff] }
 0x29f   : > { %v740_v28 = vpop.xlane.xlu0 %739 }
 0x2a0   : > { %v743_v29 = vmul.f32 %v741_v27, %v741_v27  ;;  %v742_v30 = vmul.f32 0.00390625, %v740_v28 }
 0x2a2   : > { %v744_v31 = vsub.f32 %v742_v30, %v743_v29 }
 0x2a4   : > { %v745_v32 = vmax.f32 %v744_v31, 0.0 }
 0x2a6   : > { %v746_v33 = vadd.f32 1e-05, %v745_v32 }
 0x2a8   : > { %3115 = vrsqrt.f32 %v746_v33 }
 0x2b2   : > { %v3116_v35 = vpop.eup %3115 }
 0x2b3   : > { %v748_v36 = vmul.f32 %v3116_v35, %v2917_v34  ;;  %v1072_v34 = vld [vmem:[%s3774_s7] sm:$0xff]  ;;  %v1073_v35 = vld [vmem:[%s3774_s7 + $0x8] sm:$0xff] }
 0x2b5   : > { %751 = vperm.xlu0 %3097, %v748_v36   ;;  %v756_v38 = vmul.f32 %v748_v36, %v741_v27 }
 0x2b7   : > { %v757_v39 = vsub.f32 %v2918_v37, %v756_v38 }
 0x2b9   : > { %760 = vperm.xlu1 %3098, %v757_v39  }
 0x334   : > { %v752_v40 = vpop.permute.xlu0 %751 }
 0x335   : > { %v754_v41 = vmul.f32 %v752_v40, %v721_v20  ;;  %v755_v42 = vmul.f32 %v752_v40, %v722_v21  ;;  %v2927_v21 = vld [vmem:[%s3775_s8 + $0x80] sm:$0xff] }
 0x338   : > { %v761_v43 = vpop.permute.xlu1 %760 }
 0x339   : > { %v763_v44 = vadd.f32 %v761_v43, %v754_v41  ;;  %v764_v45 = vadd.f32 %v761_v43, %v755_v42 }
 0x33b   : > { %769 = vrot.lane.b32.xlu0 %v764_v45, %s3213_s27  ;;  %767 = vrot.lane.b32.xlu1 %v763_v44, %s3213_s27 }
 0x33f   : > { %932 = vrot.lane.b32.xlu0 %v764_v45, %s3214_s28  ;;  %930 = vrot.lane.b32.xlu1 %v763_v44, %s3214_s28 }
 0x343   : > { %1027 = vperm.xlu1 %3098, %v2926_v46  }
 0x3ad   : > { %v770_v50 = vpop.permute.xlu0 %769  ;;  %v768_v51 = vpop.permute.xlu1 %767 }
 0x3ae   : > { %v773_v52 = vsel %vm771_vm5, %v770_v50, %v768_v51  ;;  %v772_v53 = vsel %vm771_vm5, %v768_v51, %v770_v50 }
 0x3af   : > { %785 = vmatprep.subr.mxu1 %v772_v53 }
 0x3b0   : > { %2920 = vmatpush1.msk.msra.mxu1 %vm454_vm6, %v773_v52 }
 0x3b1   : > { %v933_v55 = vpop.permute.xlu0 %932  ;;  %2921 = vmatmul.mubr.msk.f32.vlgmr.msra.gmra.mrb[2].mxu1 %vm781_vm7, %v780_v54  ;;  %859 = vmatprep.subr.mxu1 %v764_v45  ;;  %v931_v56 = vpop.permute.xlu1 %930 }
 0x3b2   : > { %860 = vmatpush1.msra.mxu1 %v763_v44  ;;  %v935_v57 = vsel %vm934_vm8, %v931_v56, %v933_v55  ;;  %923 = vmatprep.mubr.f32.mxu1 %v3211_v10  ;;  %v936_v59 = vsel %vm934_vm8, %v933_v55, %v931_v56 }
 0x3b3   : > { %948 = vmatprep.subr.mxu1 %v935_v57 }
 0x3b9   : > { %2922 = vmatmul.mubr.msk.f32.vlgmr.msra.gmra.mrb[2].mxu1 %vm781_vm7, %v2919_v58 }
 0x3ba   : > { %2924 = vmatpush1.msk.msra.mxu1 %vm452_vm9, %v936_v59  ;;  %1012 = vmatprep.mubr.f32.mxu1 %v3211_v10 }
 0x3c1   : > { %2925 = vmatmul.mubr.msk.f32.vlgmr.msra.gmra.mrb[2].mxu1 %vm781_vm7, %v2923_v60 }
 0x3c2   : > { %1144 = vmatprep.mubr.f32.mxu1 %v3211_v10  ;;  %v1028_v61 = vpop.permute.xlu1 %1027 }
 0x494   : > { %v1014_v62 = vpop.f32.mrb[2].mxu1 }
 0x495   : > { %vm1023_vm10 = vcmp.ge.f32.partialorder %v1014_v62, 0.0  ;;  %v1030_v63 = vmul.f32 %v1028_v61, %v1014_v62  ;;  %v1016_v0 = vpop.f32.mrb[3].mxu1 }
 0x496   : > { %vm1024_vm11 = vcmp.ge.f32.partialorder %v1016_v0, 0.0  ;;  %v1031_v1 = vmul.f32 %v1028_v61, %v1016_v0 }
 0x497   : > { %v1032_v2 = vsel %vm1023_vm10, %v1014_v62, %v1030_v63 }
 0x498   : > { %v1033_v5 = vsel %vm1024_vm11, %v1016_v0, %v1031_v1  ;;  %v1043_v6 = vmul.f32 %v1032_v2, %v1032_v2  ;;  %v2934_v0 = vld [vmem:[%s3775_s8 + $0x28] sm:$0xff] }
 0x499   : > { %v1040_v7 = vadd.f32 %v1033_v5, %v1032_v2  ;;  %v1044_v8 = vmul.f32 %v1033_v5, %v1033_v5 }
 0x49b   : > { %1041 = vadd.xlane.f32.xlu0 %v1040_v7  ;;  %v1045_v12 = vadd.f32 %v1044_v8, %v1043_v6 }
 0x49d   : > { %1046 = vadd.xlane.f32.xlu1 %v1045_v12 }
 0x528   : > { %v1042_v13 = vpop.xlane.xlu0 %1041 }
 0x529   : > { %v1048_v14 = vmul.f32 0.00390625, %v1042_v13 }
 0x52a   : > { %v1047_v15 = vpop.xlane.xlu1 %1046 }
 0x52b   : > { %v1050_v16 = vmul.f32 %v1048_v14, %v1048_v14  ;;  %v1049_v17 = vmul.f32 0.00390625, %v1047_v15 }
 0x52d   : > { %v1051_v18 = vsub.f32 %v1049_v17, %v1050_v16  ;;  %v2944_v17 = vld [vmem:[%s3775_s8 + $0x68] sm:$0xff] }
 0x52f   : > { %v1052_v19 = vmax.f32 %v1051_v18, 0.0 }
 0x531   : > { %v1053_v20 = vadd.f32 1e-05, %v1052_v19 }
 0x533   : > { %3117 = vrsqrt.f32 %v1053_v20 }
 0x53d   : > { %v3118_v22 = vpop.eup %3117 }
 0x53e   : > { %v1055_v23 = vmul.f32 %v3118_v22, %v2927_v21  ;;  %v2937_v22 = vld [vmem:[%s3773_s6 + $0x18] sm:$0xff] }
 0x540   : > { %1058 = vperm.xlu0 %3097, %v1055_v23   ;;  %v1063_v25 = vmul.f32 %v1055_v23, %v1048_v14 }
 0x542   : > { %v1064_v27 = vsub.f32 %v2928_v24, %v1063_v25 }
 0x544   : > { %1239 = vperm.xlu0 %3097, %v2933_v26   ;;  %1067 = vperm.xlu1 %3098, %v1064_v27   ;;  %v2936_v26 = vld [vmem:[%s3773_s6 + $0x28] sm:$0xff] }
 0x5bf   : > { %v1059_v28 = vpop.permute.xlu0 %1058 }
 0x5c0   : > { %v1061_v29 = vmul.f32 %v1059_v28, %v1032_v2  ;;  %v1062_v30 = vmul.f32 %v1059_v28, %v1033_v5  ;;  %v2935_v5 = vld [vmem:[%s3775_s8 + $0x48] sm:$0xff]  ;;  %v2941_v28 = vld [vmem:[%s3773_s6 + $0x20] sm:$0xff] }
 0x5c3   : > { %v1068_v31 = vpop.permute.xlu1 %1067 }
 0x5c4   : > { %v1070_v32 = vadd.f32 %v1068_v31, %v1061_v29  ;;  %v1071_v33 = vadd.f32 %v1068_v31, %v1062_v30 }
 0x5c6   : > { %1080 = vmatprep.subr.mxu1 %v1071_v33 }
 0x5c7   : > { %1081 = vmatpush1.msra.mxu1 %v1070_v32 }
 0x5c8   : > { %2929 = vmatmul.mubr.msk.f32.vlgmr.msra.gmra.mrb[4].mxu1 %vm781_vm7, %v1072_v34 }
 0x5c9   : > { %1150 = vmatprep.mubr.f32.mxu1 %v3211_v10 }
 0x5cc   : > { %2930 = vmatmul.mubr.msk.f32.gmra.mrb[6].mxu1 %vm781_vm7, %v1073_v35 }
 0x5cd   : > { %1226 = vmatprep.mubr.f32.mxu1 %v3211_v10 }
 0x69b   : > { %v1146_v36 = vpop.f32.mrb[4].mxu1 }
 0x69c   : > { %v1148_v37 = vpop.f32.mrb[5].mxu1  ;;  %v3468_v43 = vadd.f32 %v1146_v36, %v3373_v3 }
 0x69d   : > { %v3462_v41 = vadd.f32 %v1148_v37, %v3375_v4  ;;  %v1240_v4 = vpop.permute.xlu0 %1239 }
 0x69f   : > { %v1152_v38 = vpop.f32.mrb[6].mxu1 }
 0x6a0   : > { %v3459_v39 = vadd.f32 %v1152_v38, %v3377_v9  ;;  %v1154_v40 = vpop.f32.mrb[7].mxu1  ;;  %v2931_v9 = vld [vmem:[%s3772_s5 + $0x8] sm:$0xff] }
 0x6a1   : > { %v3465_v42 = vadd.f32 %v1154_v40, %v3379_v11 }
 0x6a2   : > { %v3018_v45 = vpack.c.bf16 %v3459_v39, %v3468_v43 }
 0x6a3   : > { %v3016_v44 = vpack.c.bf16 %v3465_v42, %v3462_v41 }
 0x6a5   : > { %3017 = vmatprep.subr.bf16.mxu1 %v3016_v44 }
 0x6a6   : > { %3019 = vmatpush1.bf16.msra.mxu1 %v3018_v45 }
 0x6a9   : > { %2932 = vmatmul.mubr.msk.f32.vlgmr.msra.gmra.mrb[8].mxu1 %vm636_vm2, %v2931_v9 }
 0x6aa   : > { %1368 = vmatprep.mubr.f32.mxu1 %v3211_v10 }
 0x77c   : > { %v1228_v11 = vpop.f32.mrb[8].mxu1 }
 0x77d   : > { %vm1235_vm12 = vcmp.ge.f32.partialorder %v1228_v11, 0.0  ;;  %v1242_v3 = vmul.f32 %v1240_v4, %v1228_v11  ;;  %v1230_v46 = vpop.f32.mrb[9].mxu1 }
 0x77e   : > { %vm1236_vm13 = vcmp.ge.f32.partialorder %v1230_v46, 0.0  ;;  %v1243_v47 = vmul.f32 %v1240_v4, %v1230_v46 }
 0x77f   : > { %v1244_v50 = vsel %vm1235_vm12, %v1228_v11, %v1242_v3 }
 0x780   : > { %v1245_v51 = vsel %vm1236_vm13, %v1230_v46, %v1243_v47  ;;  %v1255_v52 = vmul.f32 %v1244_v50, %v1244_v50 }
 0x781   : > { %v1252_v53 = vadd.f32 %v1245_v51, %v1244_v50  ;;  %v1256_v54 = vmul.f32 %v1245_v51, %v1245_v51 }
 0x783   : > { %1253 = vadd.xlane.f32.xlu1 %v1252_v53  ;;  %v1257_v55 = vadd.f32 %v1256_v54, %v1255_v52  ;;  %v2946_v53 = vld [vmem:[%s3775_s8 + $0xa8] sm:$0xff] }
 0x785   : > { %1258 = vadd.xlane.f32.xlu0 %v1257_v55  ;;  %v2953_v55 = vld [vmem:[%s3775_s8 + $0x10] sm:$0xff] }
 0x810   : > { %v1254_v56 = vpop.xlane.xlu1 %1253 }
 0x811   : > { %v1260_v57 = vmul.f32 0.00390625, %v1254_v56 }
 0x812   : > { %v1259_v58 = vpop.xlane.xlu0 %1258 }
 0x813   : > { %v1262_v59 = vmul.f32 %v1260_v57, %v1260_v57  ;;  %v1261_v60 = vmul.f32 0.00390625, %v1259_v58 }
 0x815   : > { %v1263_v61 = vsub.f32 %v1261_v60, %v1262_v59 }
 0x817   : > { %v1264_v62 = vmax.f32 %v1263_v61, 0.0 }
 0x819   : > { %v1265_v63 = vadd.f32 1e-05, %v1264_v62 }
 0x81b   : > { %3119 = vrsqrt.f32 %v1265_v63  ;;  %v2947_v63 = vld [vmem:[%s3774_s7 + $0x10] sm:$0xff] }
 0x825   : > { %v3120_v1 = vpop.eup %3119 }
 0x826   : > { %v1267_v2 = vmul.f32 %v3120_v1, %v2934_v0  ;;  %v2948_v0 = vld [vmem:[%s3774_s7 + $0x18] sm:$0xff] }
 0x828   : > { %1270 = vperm.xlu0 %3097, %v1267_v2   ;;  %v1275_v6 = vmul.f32 %v1267_v2, %v1260_v57 }
 0x82a   : > { %v1276_v7 = vsub.f32 %v2935_v5, %v1275_v6 }
 0x82c   : > { %1279 = vperm.xlu1 %3098, %v1276_v7  }
 0x8a7   : > { %v1271_v8 = vpop.permute.xlu0 %1270 }
 0x8a8   : > { %v1273_v12 = vmul.f32 %v1271_v8, %v1244_v50  ;;  %v1274_v13 = vmul.f32 %v1271_v8, %v1245_v51  ;;  %v2945_v50 = vld [vmem:[%s3775_s8 + $0x88] sm:$0xff] }
 0x8ab   : > { %v1280_v14 = vpop.permute.xlu1 %1279 }
 0x8ac   : > { %v1282_v15 = vadd.f32 %v1280_v14, %v1273_v12  ;;  %v1283_v16 = vadd.f32 %v1280_v14, %v1274_v13 }
 0x8ae   : > { %1288 = vrot.lane.b32.xlu0 %v1283_v16, %s3215_s14  ;;  %1286 = vrot.lane.b32.xlu1 %v1282_v15, %s3215_s14 }
 0x8b2   : > { %1451 = vrot.lane.b32.xlu0 %v1283_v16, %s3213_s27  ;;  %1449 = vrot.lane.b32.xlu1 %v1282_v15, %s3213_s27 }
 0x8b6   : > { %1541 = vperm.xlu1 %3098, %v2944_v17  }
 0x920   : > { %v1289_v18 = vpop.permute.xlu0 %1288  ;;  %v1287_v19 = vpop.permute.xlu1 %1286 }
 0x921   : > { %v1292_v20 = vsel %vm1290_vm14, %v1289_v18, %v1287_v19  ;;  %v1291_v21 = vsel %vm1290_vm14, %v1287_v19, %v1289_v18 }
 0x922   : > { %1304 = vmatprep.subr.mxu1 %v1291_v21 }
 0x923   : > { %2938 = vmatpush1.msk.msra.mxu1 %vm456_vm15, %v1292_v20 }
 0x924   : > { %v1452_v23 = vpop.permute.xlu0 %1451  ;;  %2939 = vmatmul.mubr.msk.f32.vlgmr.msra.gmra.mrb[10].mxu1 %vm781_vm7, %v2937_v22  ;;  %1378 = vmatprep.subr.mxu1 %v1283_v16  ;;  %v1450_v24 = vpop.permute.xlu1 %1449 }
 0x925   : > { %1379 = vmatpush1.msra.mxu1 %v1282_v15  ;;  %v1453_v25 = vsel %vm771_vm5, %v1450_v24, %v1452_v23  ;;  %1442 = vmatprep.mubr.f32.mxu1 %v3211_v10  ;;  %v1454_v27 = vsel %vm771_vm5, %v1452_v23, %v1450_v24 }
 0x926   : > { %1462 = vmatprep.subr.mxu1 %v1453_v25 }
 0x92c   : > { %2940 = vmatmul.mubr.msk.f32.vlgmr.msra.gmra.mrb[10].mxu1 %vm781_vm7, %v2936_v26 }
 0x92d   : > { %2942 = vmatpush1.msk.msra.mxu1 %vm454_vm6, %v1454_v27  ;;  %1526 = vmatprep.mubr.f32.mxu1 %v3211_v10 }
 0x934   : > { %2943 = vmatmul.mubr.msk.f32.vlgmr.msra.gmra.mrb[10].mxu1 %vm781_vm7, %v2941_v28 }
 0x935   : > { %1878 = vmatprep.mubr.f32.mxu1 %v3211_v10  ;;  %v1542_v29 = vpop.permute.xlu1 %1541 }
 0xa07   : > { %v1528_v30 = vpop.f32.mrb[10].mxu1 }
 0xa08   : > { %vm1537_vm0 = vcmp.ge.f32.partialorder %v1528_v30, 0.0  ;;  %v1544_v31 = vmul.f32 %v1542_v29, %v1528_v30  ;;  %v1530_v32 = vpop.f32.mrb[11].mxu1 }
 0xa09   : > { %vm1538_vm1 = vcmp.ge.f32.partialorder %v1530_v32, 0.0  ;;  %v1545_v33 = vmul.f32 %v1542_v29, %v1530_v32 }
 0xa0a   : > { %v1546_v34 = vsel %vm1537_vm0, %v1528_v30, %v1544_v31 }
 0xa0b   : > { %v1547_v35 = vsel %vm1538_vm1, %v1530_v32, %v1545_v33  ;;  %v1557_v36 = vmul.f32 %v1546_v34, %v1546_v34  ;;  %v2954_v32 = vld [vmem:[%s3775_s8 + $0x30] sm:$0xff] }
 0xa0c   : > { %v1554_v37 = vadd.f32 %v1547_v35, %v1546_v34  ;;  %v1558_v38 = vmul.f32 %v1547_v35, %v1547_v35 }
 0xa0e   : > { %1555 = vadd.xlane.f32.xlu0 %v1554_v37  ;;  %v1559_v40 = vadd.f32 %v1558_v38, %v1557_v36 }
 0xa10   : > { %1560 = vadd.xlane.f32.xlu1 %v1559_v40 }
 0xa9b   : > { %v1556_v44 = vpop.xlane.xlu0 %1555 }
 0xa9c   : > { %v1562_v45 = vmul.f32 0.00390625, %v1556_v44 }
 0xa9d   : > { %v1561_v9 = vpop.xlane.xlu1 %1560 }
 0xa9e   : > { %v1564_v4 = vmul.f32 %v1562_v45, %v1562_v45  ;;  %v1563_v11 = vmul.f32 0.00390625, %v1561_v9 }
 0xaa0   : > { %v1565_v3 = vsub.f32 %v1563_v11, %v1564_v4  ;;  %v2964_v11 = vld [vmem:[%s3775_s8 + $0x70] sm:$0xff] }
 0xaa2   : > { %v1566_v46 = vmax.f32 %v1565_v3, 0.0 }
 0xaa4   : > { %v1567_v47 = vadd.f32 1e-05, %v1566_v46 }
 0xaa6   : > { %3121 = vrsqrt.f32 %v1567_v47 }
 0xab0   : > { %v3122_v51 = vpop.eup %3121 }
 0xab1   : > { %v1569_v52 = vmul.f32 %v3122_v51, %v2945_v50  ;;  %v2957_v51 = vld [vmem:[%s3773_s6 + $0x30] sm:$0xff] }
 0xab3   : > { %1572 = vperm.xlu0 %3097, %v1569_v52   ;;  %v1577_v54 = vmul.f32 %v1569_v52, %v1562_v45 }
 0xab5   : > { %v1578_v56 = vsub.f32 %v2946_v53, %v1577_v54 }
 0xab7   : > { %1754 = vperm.xlu0 %3097, %v2953_v55   ;;  %1581 = vperm.xlu1 %3098, %v1578_v56   ;;  %v2956_v55 = vld [vmem:[%s3773_s6 + $0x40] sm:$0xff] }
 0xb32   : > { %v1573_v57 = vpop.permute.xlu0 %1572 }
 0xb33   : > { %v1575_v58 = vmul.f32 %v1573_v57, %v1546_v34  ;;  %v1576_v59 = vmul.f32 %v1573_v57, %v1547_v35  ;;  %v2955_v35 = vld [vmem:[%s3775_s8 + $0x50] sm:$0xff]  ;;  %v2961_v57 = vld [vmem:[%s3773_s6 + $0x38] sm:$0xff] }
 0xb36   : > { %v1582_v60 = vpop.permute.xlu1 %1581 }
 0xb37   : > { %v1584_v61 = vadd.f32 %v1582_v60, %v1575_v58  ;;  %v1585_v62 = vadd.f32 %v1582_v60, %v1576_v59 }
 0xb39   : > { %1595 = vmatprep.subr.mxu0 %v1585_v62 }
 0xb3a   : > { %1596 = vmatpush1.msra.mxu0 %v1584_v61 }
 0xb3b   : > { %2949 = vmatmul.mubr.msk.f32.vlgmr.msra.gmra.mrb[8].mxu0 %vm781_vm7, %v2947_v63 }
 0xb3c   : > { %1665 = vmatprep.mubr.f32.mxu0 %v3211_v10 }
 0xb3f   : > { %2950 = vmatmul.mubr.msk.f32.gmra.mrb[10].mxu0 %vm781_vm7, %v2948_v0 }
 0xb40   : > { %1741 = vmatprep.mubr.f32.mxu0 %v3211_v10 }
 0xc0e   : > { %v1661_v1 = vpop.f32.mrb[8].mxu0 }
 0xc0f   : > { %v1663_v2 = vpop.f32.mrb[9].mxu0  ;;  %v3550_v13 = vadd.f32 %v1661_v1, %v3468_v43 }
 0xc10   : > { %v3544_v8 = vadd.f32 %v1663_v2, %v3462_v41  ;;  %v1755_v41 = vpop.permute.xlu0 %1754 }
 0xc12   : > { %v1667_v5 = vpop.f32.mrb[10].mxu0 }
 0xc13   : > { %v3541_v6 = vadd.f32 %v1667_v5, %v3459_v39  ;;  %v1669_v7 = vpop.f32.mrb[11].mxu0  ;;  %v2951_v39 = vld [vmem:[%s3772_s5 + $0x10] sm:$0xff] }
 0xc14   : > { %v3547_v12 = vadd.f32 %v1669_v7, %v3465_v42 }
 0xc15   : > { %v3022_v15 = vpack.c.bf16 %v3541_v6, %v3550_v13 }
 0xc16   : > { %v3020_v14 = vpack.c.bf16 %v3547_v12, %v3544_v8 }
 0xc18   : > { %3021 = vmatprep.subr.bf16.mxu0 %v3020_v14 }
 0xc19   : > { %3023 = vmatpush1.bf16.msra.mxu0 %v3022_v15 }
 0xc1c   : > { %2952 = vmatmul.mubr.msk.f32.vlgmr.msra.gmra.mrb[12].mxu0 %vm636_vm2, %v2951_v39 }
 0xc1d   : > { %2169 = vmatprep.mubr.f32.mxu0 %v3211_v10 }
 0xcef   : > { %v1743_v42 = vpop.f32.mrb[12].mxu0 }
 0xcf0   : > { %vm1750_vm3 = vcmp.ge.f32.partialorder %v1743_v42, 0.0  ;;  %v1757_v43 = vmul.f32 %v1755_v41, %v1743_v42  ;;  %v1745_v16 = vpop.f32.mrb[13].mxu0 }
 0xcf1   : > { %vm1751_vm4 = vcmp.ge.f32.partialorder %v1745_v16, 0.0  ;;  %v1758_v17 = vmul.f32 %v1755_v41, %v1745_v16 }
 0xcf2   : > { %v1759_v18 = vsel %vm1750_vm3, %v1743_v42, %v1757_v43 }
 0xcf3   : > { %v1760_v19 = vsel %vm1751_vm4, %v1745_v16, %v1758_v17  ;;  %v1770_v20 = vmul.f32 %v1759_v18, %v1759_v18 }
 0xcf4   : > { %v1767_v21 = vadd.f32 %v1760_v19, %v1759_v18  ;;  %v1771_v22 = vmul.f32 %v1760_v19, %v1760_v19 }
 0xcf6   : > { %1768 = vadd.xlane.f32.xlu1 %v1767_v21  ;;  %v1772_v23 = vadd.f32 %v1771_v22, %v1770_v20  ;;  %v2966_v21 = vld [vmem:[%s3775_s8 + $0xb0] sm:$0xff] }
 0xcf8   : > { %1773 = vadd.xlane.f32.xlu0 %v1772_v23  ;;  %v2973_v23 = vld [vmem:[%s3775_s8 + $0x18] sm:$0xff] }
 0xd83   : > { %v1769_v24 = vpop.xlane.xlu1 %1768 }
 0xd84   : > { %v1775_v25 = vmul.f32 0.00390625, %v1769_v24 }
 0xd85   : > { %v1774_v26 = vpop.xlane.xlu0 %1773 }
 0xd86   : > { %v1777_v27 = vmul.f32 %v1775_v25, %v1775_v25  ;;  %v1776_v28 = vmul.f32 0.00390625, %v1774_v26 }
 0xd88   : > { %v1778_v29 = vsub.f32 %v1776_v28, %v1777_v27 }
 0xd8a   : > { %v1779_v30 = vmax.f32 %v1778_v29, 0.0 }
 0xd8c   : > { %v1780_v31 = vadd.f32 1e-05, %v1779_v30 }
 0xd8e   : > { %3123 = vrsqrt.f32 %v1780_v31  ;;  %v2967_v31 = vld [vmem:[%s3774_s7 + $0x20] sm:$0xff] }
 0xd98   : > { %v3124_v33 = vpop.eup %3123 }
 0xd99   : > { %v1782_v34 = vmul.f32 %v3124_v33, %v2954_v32  ;;  %v2968_v32 = vld [vmem:[%s3774_s7 + $0x28] sm:$0xff] }
 0xd9b   : > { %1785 = vperm.xlu0 %3097, %v1782_v34   ;;  %v1790_v36 = vmul.f32 %v1782_v34, %v1775_v25 }
 0xd9d   : > { %v1791_v37 = vsub.f32 %v2955_v35, %v1790_v36 }
 0xd9f   : > { %1794 = vperm.xlu1 %3098, %v1791_v37  }
 0xe1a   : > { %v1786_v38 = vpop.permute.xlu0 %1785 }
 0xe1b   : > { %v1788_v40 = vmul.f32 %v1786_v38, %v1759_v18  ;;  %v1789_v44 = vmul.f32 %v1786_v38, %v1760_v19  ;;  %v2965_v18 = vld [vmem:[%s3775_s8 + $0x90] sm:$0xff] }
 0xe1e   : > { %v1795_v45 = vpop.permute.xlu1 %1794 }
 0xe1f   : > { %v1797_v9 = vadd.f32 %v1795_v45, %v1788_v40  ;;  %v1798_v4 = vadd.f32 %v1795_v45, %v1789_v44 }
 0xe21   : > { %1803 = vrot.lane.b32.xlu0 %v1798_v4, %s3213_s27  ;;  %1801 = vrot.lane.b32.xlu1 %v1797_v9, %s3213_s27 }
 0xe25   : > { %1961 = vrot.lane.b32.xlu0 %v1798_v4, %s3214_s28  ;;  %1959 = vrot.lane.b32.xlu1 %v1797_v9, %s3214_s28 }
 0xe29   : > { %2051 = vperm.xlu1 %3098, %v2964_v11  }
 0xe93   : > { %v1804_v3 = vpop.permute.xlu0 %1803  ;;  %v1802_v46 = vpop.permute.xlu1 %1801 }
 0xe94   : > { %v1806_v47 = vsel %vm771_vm5, %v1804_v3, %v1802_v46  ;;  %v1805_v50 = vsel %vm771_vm5, %v1802_v46, %v1804_v3 }
 0xe95   : > { %1814 = vmatprep.subr.mxu1 %v1805_v50 }
 0xe96   : > { %2958 = vmatpush1.msk.msra.mxu1 %vm454_vm6, %v1806_v47 }
 0xe97   : > { %v1962_v52 = vpop.permute.xlu0 %1961  ;;  %2959 = vmatmul.mubr.msk.f32.vlgmr.msra.gmra.mrb[12].mxu1 %vm781_vm7, %v2957_v51  ;;  %1888 = vmatprep.subr.mxu1 %v1798_v4  ;;  %v1960_v53 = vpop.permute.xlu1 %1959 }
 0xe98   : > { %1889 = vmatpush1.msra.mxu1 %v1797_v9  ;;  %v1963_v54 = vsel %vm934_vm8, %v1960_v53, %v1962_v52  ;;  %1952 = vmatprep.mubr.f32.mxu1 %v3211_v10  ;;  %v1964_v56 = vsel %vm934_vm8, %v1962_v52, %v1960_v53 }
 0xe99   : > { %1972 = vmatprep.subr.mxu1 %v1963_v54 }
 0xe9f   : > { %2960 = vmatmul.mubr.msk.f32.vlgmr.msra.gmra.mrb[12].mxu1 %vm781_vm7, %v2956_v55 }
 0xea0   : > { %2962 = vmatpush1.msk.msra.mxu1 %vm452_vm9, %v1964_v56  ;;  %2036 = vmatprep.mubr.f32.mxu1 %v3211_v10 }
 0xea7   : > { %2963 = vmatmul.mubr.msk.f32.vlgmr.msra.gmra.mrb[12].mxu1 %vm781_vm7, %v2961_v57 }
 0xea8   : > { %2388 = vmatprep.mubr.f32.mxu1 %v3211_v10  ;;  %v2052_v58 = vpop.permute.xlu1 %2051 }
 0xf7a   : > { %v2038_v59 = vpop.f32.mrb[12].mxu1 }
 0xf7b   : > { %vm2047_vm10 = vcmp.ge.f32.partialorder %v2038_v59, 0.0  ;;  %v2054_v60 = vmul.f32 %v2052_v58, %v2038_v59  ;;  %v2040_v61 = vpop.f32.mrb[13].mxu1 }
 0xf7c   : > { %vm2048_vm8 = vcmp.ge.f32.partialorder %v2040_v61, 0.0  ;;  %v2055_v62 = vmul.f32 %v2052_v58, %v2040_v61 }
 0xf7d   : > { %v2056_v63 = vsel %vm2047_vm10, %v2038_v59, %v2054_v60 }
 0xf7e   : > { %v2057_v0 = vsel %vm2048_vm8, %v2040_v61, %v2055_v62  ;;  %v2067_v1 = vmul.f32 %v2056_v63, %v2056_v63  ;;  %v2974_v61 = vld [vmem:[%s3775_s8 + $0x38] sm:$0xff] }
 0xf7f   : > { %v2064_v2 = vadd.f32 %v2057_v0, %v2056_v63  ;;  %v2068_v5 = vmul.f32 %v2057_v0, %v2057_v0 }
 0xf81   : > { %2065 = vadd.xlane.f32.xlu0 %v2064_v2  ;;  %v2069_v7 = vadd.f32 %v2068_v5, %v2067_v1 }
 0xf83   : > { %2070 = vadd.xlane.f32.xlu1 %v2069_v7 }
0x100e   : > { %v2066_v14 = vpop.xlane.xlu0 %2065 }
0x100f   : > { %v2072_v15 = vmul.f32 0.00390625, %v2066_v14 }
0x1010   : > { %v2071_v39 = vpop.xlane.xlu1 %2070 }
0x1011   : > { %v2074_v41 = vmul.f32 %v2072_v15, %v2072_v15  ;;  %v2073_v42 = vmul.f32 0.00390625, %v2071_v39 }
0x1013   : > { %v2075_v43 = vsub.f32 %v2073_v42, %v2074_v41  ;;  %v2984_v42 = vld [vmem:[%s3775_s8 + $0x78] sm:$0xff] }
0x1015   : > { %v2076_v16 = vmax.f32 %v2075_v43, 0.0 }
0x1017   : > { %v2077_v17 = vadd.f32 1e-05, %v2076_v16 }
0x1019   : > { %3125 = vrsqrt.f32 %v2077_v17 }
0x1023   : > { %v3126_v19 = vpop.eup %3125 }
0x1024   : > { %v2079_v20 = vmul.f32 %v3126_v19, %v2965_v18  ;;  %v2977_v19 = vld [vmem:[%s3773_s6 + $0x48] sm:$0xff] }
0x1026   : > { %2082 = vperm.xlu0 %3097, %v2079_v20   ;;  %v2087_v22 = vmul.f32 %v2079_v20, %v2072_v15 }
0x1028   : > { %v2088_v24 = vsub.f32 %v2966_v21, %v2087_v22 }
0x102a   : > { %2264 = vperm.xlu0 %3097, %v2973_v23   ;;  %2091 = vperm.xlu1 %3098, %v2088_v24   ;;  %v2976_v23 = vld [vmem:[%s3773_s6 + $0x58] sm:$0xff] }
0x10a5   : > { %v2083_v25 = vpop.permute.xlu0 %2082 }
0x10a6   : > { %v2085_v26 = vmul.f32 %v2083_v25, %v2056_v63  ;;  %v2086_v27 = vmul.f32 %v2083_v25, %v2057_v0  ;;  %v2975_v0 = vld [vmem:[%s3775_s8 + $0x58] sm:$0xff]  ;;  %v2981_v25 = vld [vmem:[%s3773_s6 + $0x50] sm:$0xff] }
0x10a9   : > { %v2092_v28 = vpop.permute.xlu1 %2091 }
0x10aa   : > { %v2094_v29 = vadd.f32 %v2092_v28, %v2085_v26  ;;  %v2095_v30 = vadd.f32 %v2092_v28, %v2086_v27 }
0x10ac   : > { %2105 = vmatprep.subr.mxu0 %v2095_v30 }
0x10ad   : > { %2106 = vmatpush1.msra.mxu0 %v2094_v29 }
0x10ae   : > { %2969 = vmatmul.mubr.msk.f32.vlgmr.msra.gmra.mrb[14].mxu0 %vm781_vm7, %v2967_v31 }
0x10af   : > { %2175 = vmatprep.mubr.f32.mxu0 %v3211_v10 }
0x10b2   : > { %2970 = vmatmul.mubr.msk.f32.gmra.mrb[16].mxu0 %vm781_vm7, %v2968_v32 }
0x10b3   : > { %2251 = vmatprep.mubr.f32.mxu0 %v3211_v10 }
0x1181   : > { %v2171_v33 = vpop.f32.mrb[14].mxu0 }
0x1182   : > { %v2173_v34 = vpop.f32.mrb[15].mxu0  ;;  %v3630_v44 = vadd.f32 %v2171_v33, %v3550_v13 }
0x1183   : > { %v3624_v38 = vadd.f32 %v2173_v34, %v3544_v8  ;;  %v2265_v8 = vpop.permute.xlu0 %2264 }
0x1185   : > { %v2177_v35 = vpop.f32.mrb[16].mxu0 }
0x1186   : > { %v3621_v36 = vadd.f32 %v2177_v35, %v3541_v6  ;;  %v2179_v37 = vpop.f32.mrb[17].mxu0  ;;  %v2971_v6 = vld [vmem:[%s3772_s5 + $0x18] sm:$0xff] }
0x1187   : > { %v3627_v40 = vadd.f32 %v2179_v37, %v3547_v12 }
0x1188   : > { %v3026_v9 = vpack.c.bf16 %v3621_v36, %v3630_v44 }
0x1189   : > { %v3024_v45 = vpack.c.bf16 %v3627_v40, %v3624_v38 }
0x118b   : > { %3025 = vmatprep.subr.bf16.mxu0 %v3024_v45 }
0x118c   : > { %3027 = vmatpush1.bf16.msra.mxu0 %v3026_v9 }
0x118f   : > { %2972 = vmatmul.mubr.msk.f32.vlgmr.msra.gmra.mrb[18].mxu0 %vm636_vm2, %v2971_v6 }
0x1190   : > { %2679 = vmatprep.mubr.f32.mxu0 %v3211_v10 }
0x1262   : > { %v2253_v12 = vpop.f32.mrb[18].mxu0 }
0x1263   : > { %vm2260_vm9 = vcmp.ge.f32.partialorder %v2253_v12, 0.0  ;;  %v2267_v13 = vmul.f32 %v2265_v8, %v2253_v12  ;;  %v2255_v4 = vpop.f32.mrb[19].mxu0 }
0x1264   : > { %vm2261_vm11 = vcmp.ge.f32.partialorder %v2255_v4, 0.0  ;;  %v2268_v11 = vmul.f32 %v2265_v8, %v2255_v4 }
0x1265   : > { %v2269_v3 = vsel %vm2260_vm9, %v2253_v12, %v2267_v13 }
0x1266   : > { %v2270_v46 = vsel %vm2261_vm11, %v2255_v4, %v2268_v11  ;;  %v2280_v47 = vmul.f32 %v2269_v3, %v2269_v3  ;;  %v2985_v4 = vld [vmem:[%s3775_s8 + $0x98] sm:$0xff] }
0x1267   : > { %v2277_v50 = vadd.f32 %v2270_v46, %v2269_v3  ;;  %v2281_v51 = vmul.f32 %v2270_v46, %v2270_v46 }
0x1269   : > { %2278 = vadd.xlane.f32.xlu1 %v2277_v50  ;;  %v2282_v52 = vadd.f32 %v2281_v51, %v2280_v47  ;;  %v2694_v50 = vld [vmem:[%s3777_s10] sm:$0xff] }
0x126b   : > { %2283 = vadd.xlane.f32.xlu0 %v2282_v52  ;;  %v2695_v52 = vld [vmem:[%s3777_s10 + $0x8] sm:$0x1] }
0x12f6   : > { %v2279_v53 = vpop.xlane.xlu1 %2278 }
0x12f7   : > { %v2285_v54 = vmul.f32 0.00390625, %v2279_v53 }
0x12f8   : > { %v2284_v55 = vpop.xlane.xlu0 %2283 }
0x12f9   : > { %v2287_v56 = vmul.f32 %v2285_v54, %v2285_v54  ;;  %v2286_v57 = vmul.f32 0.00390625, %v2284_v55 }
0x12fb   : > { %v2288_v58 = vsub.f32 %v2286_v57, %v2287_v56 }
0x12fd   : > { %v2289_v59 = vmax.f32 %v2288_v58, 0.0 }
0x12ff   : > { %v2290_v60 = vadd.f32 1e-05, %v2289_v59  ;;  %v2987_v59 = vld [vmem:[%s3774_s7 + $0x30] sm:$0xff] }
0x1301   : > { %3127 = vrsqrt.f32 %v2290_v60  ;;  %v2988_v60 = vld [vmem:[%s3774_s7 + $0x38] sm:$0xff] }
0x130b   : > { %v3128_v62 = vpop.eup %3127 }
0x130c   : > { %v2292_v63 = vmul.f32 %v3128_v62, %v2974_v61 }
0x130e   : > { %2295 = vperm.xlu0 %3097, %v2292_v63   ;;  %v2300_v1 = vmul.f32 %v2292_v63, %v2285_v54 }
0x1310   : > { %v2301_v2 = vsub.f32 %v2975_v0, %v2300_v1 }
0x1312   : > { %2304 = vperm.xlu1 %3098, %v2301_v2  }
0x138d   : > { %v2296_v5 = vpop.permute.xlu0 %2295 }
0x138e   : > { %v2298_v7 = vmul.f32 %v2296_v5, %v2269_v3  ;;  %v2299_v14 = vmul.f32 %v2296_v5, %v2270_v46  ;;  %v2986_v46 = vld [vmem:[%s3775_s8 + $0xb8] sm:$0xff] }
0x1391   : > { %v2305_v15 = vpop.permute.xlu1 %2304 }
0x1392   : > { %v2307_v39 = vadd.f32 %v2305_v15, %v2298_v7  ;;  %v2308_v41 = vadd.f32 %v2305_v15, %v2299_v14 }
0x1394   : > { %2313 = vrot.lane.b32.xlu0 %v2308_v41, %s3215_s14  ;;  %2311 = vrot.lane.b32.xlu1 %v2307_v39, %s3215_s14 }
0x1398   : > { %2471 = vrot.lane.b32.xlu0 %v2308_v41, %s3213_s27  ;;  %2469 = vrot.lane.b32.xlu1 %v2307_v39, %s3213_s27  ;;  %s422_s27 = scalar_lea.vmem [#allocation3], %s2905_s20 }
0x1399   : > { %s2831_s14 = sshll.u32 %s422_s27, 4  ;;  %s3723_s14 = int_to_ptr.vmem [resolvable:$true] %s2831_s14 }
0x139a   : > { %s3147_s28 = scalar_lea.vmem %s3723_s14, 512  ;;  %p3154_p2 = scmp.lt.s32.totalorder %s3723_s14, %s3152_s30 }
0x139b   : > { %p3148_p13 = scmp.ne.s32.totalorder %s3723_s14, %s3147_s28  ;;  %p3155_p3 = scmp.lt.s32.totalorder %s3153_s12, %s3147_s28 }
0x139c   : > { %2561 = vperm.xlu1 %3098, %v2984_v42  }
0x139d   : > { %p3149_p0 = pnand %p3148_p13, %p3318_p6  ;;  %p3156_p4 = por %p3155_p3, %p3154_p2 }
0x139f   : > { %p3150_p1 = pneg %p3149_p0 }
0x13a1   : > { %p3157_p5 = pnand %p3156_p4, %p3150_p1 }
0x1406   : > { %v2314_v43 = vpop.permute.xlu0 %2313  ;;  %v2312_v16 = vpop.permute.xlu1 %2311 }
0x1407   : > { %v2316_v17 = vsel %vm1290_vm14, %v2314_v43, %v2312_v16  ;;  %v2315_v18 = vsel %vm1290_vm14, %v2312_v16, %v2314_v43 }
0x1408   : > { %2324 = vmatprep.subr.mxu1 %v2315_v18 }
0x1409   : > { %2978 = vmatpush1.msk.msra.mxu1 %vm456_vm15, %v2316_v17 }
0x140a   : > { %v2472_v20 = vpop.permute.xlu0 %2471  ;;  %2979 = vmatmul.mubr.msk.f32.vlgmr.msra.gmra.mrb[14].mxu1 %vm781_vm7, %v2977_v19  ;;  %2398 = vmatprep.subr.mxu1 %v2308_v41  ;;  %v2470_v21 = vpop.permute.xlu1 %2469 }
0x140b   : > { %2399 = vmatpush1.msra.mxu1 %v2307_v39  ;;  %v2473_v22 = vsel %vm771_vm5, %v2470_v21, %v2472_v20  ;;  %2462 = vmatprep.mubr.f32.mxu1 %v3211_v10  ;;  %v2474_v24 = vsel %vm771_vm5, %v2472_v20, %v2470_v21  ;;  %v2692_v39 = vld [vmem:[%s3776_s9] sm:$0xff] }
0x140c   : > { %2482 = vmatprep.subr.mxu1 %v2473_v22 }
0x1412   : > { %2980 = vmatmul.mubr.msk.f32.vlgmr.msra.gmra.mrb[14].mxu1 %vm781_vm7, %v2976_v23 }
0x1413   : > { %2982 = vmatpush1.msk.msra.mxu1 %vm454_vm6, %v2474_v24  ;;  %2546 = vmatprep.mubr.f32.mxu1 %v3211_v10 }
0x141a   : > { %2983 = vmatmul.mubr.msk.f32.vlgmr.msra.gmra.mrb[14].mxu1 %vm781_vm7, %v2981_v25 }
0x141b   : > { %v2562_v26 = vpop.permute.xlu1 %2561 }
0x14ed   : > { %v2548_v27 = vpop.f32.mrb[14].mxu1 }
0x14ee   : > { %vm2557_vm12 = vcmp.ge.f32.partialorder %v2548_v27, 0.0  ;;  %v2564_v28 = vmul.f32 %v2562_v26, %v2548_v27  ;;  %v2550_v29 = vpop.f32.mrb[15].mxu1 }
0x14ef   : > { %vm2558_vm13 = vcmp.ge.f32.partialorder %v2550_v29, 0.0  ;;  %v2565_v48 = vmul.f32 %v2562_v26, %v2550_v29 }
0x14f0   : > { %v2566_v30 = vsel %vm2557_vm12, %v2548_v27, %v2564_v28 }
0x14f1   : > { %v2567_v31 = vsel %vm2558_vm13, %v2550_v29, %v2565_v48  ;;  %v2577_v32 = vmul.f32 %v2566_v30, %v2566_v30 }
0x14f2   : > { %v2574_v49 = vadd.f32 %v2567_v31, %v2566_v30  ;;  %v2578_v33 = vmul.f32 %v2567_v31, %v2567_v31 }
0x14f4   : > { %2575 = vadd.xlane.f32.xlu0 %v2574_v49  ;;  %v2579_v34 = vadd.f32 %v2578_v33, %v2577_v32 }
0x14f6   : > { %2580 = vadd.xlane.f32.xlu1 %v2579_v34 }
0x1581   : > { %v2576_v35 = vpop.xlane.xlu0 %2575 }
0x1582   : > { %v2582_v37 = vmul.f32 0.00390625, %v2576_v35 }
0x1583   : > { %v2581_v45 = vpop.xlane.xlu1 %2580 }
0x1584   : > { %v2584_v9 = vmul.f32 %v2582_v37, %v2582_v37  ;;  %v2583_v6 = vmul.f32 0.00390625, %v2581_v45 }
0x1586   : > { %v2585_v8 = vsub.f32 %v2583_v6, %v2584_v9 }
0x1588   : > { %v2586_v12 = vmax.f32 %v2585_v8, 0.0 }
0x158a   : > { %v2587_v13 = vadd.f32 1e-05, %v2586_v12 }
0x158c   : > { %3129 = vrsqrt.f32 %v2587_v13 }
0x1596   : > { %v3130_v11 = vpop.eup %3129 }
0x1597   : > { %v2589_v3 = vmul.f32 %v3130_v11, %v2985_v4 }
0x1599   : > { %2592 = vperm.xlu0 %3097, %v2589_v3   ;;  %v2597_v47 = vmul.f32 %v2589_v3, %v2582_v37 }
0x159b   : > { %v2598_v51 = vsub.f32 %v2986_v46, %v2597_v47 }
0x159d   : > { %2698 = vperm.xlu0 %3097, %v2694_v50   ;;  %2601 = vperm.xlu1 %3098, %v2598_v51  }
0x15a1   : > { %2703 = vperm.xlu1 %3098, %v2695_v52  }
0x1618   : > { %v2593_v53 = vpop.permute.xlu0 %2592 }
0x1619   : > { %v2595_v54 = vmul.f32 %v2593_v53, %v2566_v30  ;;  %v2596_v55 = vmul.f32 %v2593_v53, %v2567_v31 }
0x161c   : > { %v2602_v56 = vpop.permute.xlu1 %2601 }
0x161d   : > { %v2604_v57 = vadd.f32 %v2602_v56, %v2595_v54  ;;  %v2605_v58 = vadd.f32 %v2602_v56, %v2596_v55 }
0x161f   : > { %2615 = vmatprep.subr.mxu0 %v2605_v58 }
0x1620   : > { %2616 = vmatpush1.msra.mxu0 %v2604_v57  ;;  %v2704_v16 = vpop.permute.xlu1 %2703 }
0x1621   : > { %2989 = vmatmul.mubr.msk.f32.vlgmr.msra.gmra.mrb[20].mxu0 %vm781_vm7, %v2987_v59 }
0x1622   : > { %2685 = vmatprep.mubr.f32.mxu0 %v3211_v10 }
0x1625   : > { %2990 = vmatmul.mubr.msk.f32.gmra.mrb[22].mxu0 %vm781_vm7, %v2988_v60 }
0x1626   : > { %2776 = vmatprep.mubr.f32.mxu0 %v3211_v10 }
0x16f4   : > { %v2681_v61 = vpop.f32.mrb[20].mxu0 }
0x16f5   : > { %v2683_v62 = vpop.f32.mrb[21].mxu0  ;;  %v2682_v0 = vadd.f32 %v2681_v61, %v3630_v44 }
0x16f6   : > { %v2684_v5 = vadd.f32 %v2683_v62, %v3624_v38  ;;  %v2699_v38 = vpop.permute.xlu0 %2698 }
0x16f8   : > { %v2687_v63 = vpop.f32.mrb[22].mxu0 }
0x16f9   : > { %v2688_v1 = vadd.f32 %v2687_v63, %v3621_v36  ;;  %v2689_v2 = vpop.f32.mrb[23].mxu0  ;;  %v2693_v36 = vld [vmem:[%s3776_s9 + $0x8] sm:$0x1] }
0x16fa   : > { %v2690_v7 = vadd.f32 %v2689_v2, %v3627_v40 }
0x16fb   : > { %v3030_v14 = vpack.c.bf16 %v2688_v1, %v2682_v0 }
0x16fc   : > { %v3028_v15 = vpack.c.bf16 %v2690_v7, %v2684_v5 }
0x16fe   : > { %3029 = vmatprep.subr.bf16.mxu0 %v3028_v15 }
0x16ff   : > { %3031 = vmatpush1.bf16.msra.mxu0 %v3030_v14 }
0x1702   : > { %2991 = vmatmul.mubr.msk.f32.vlgmr.msra.gmra.mrb[24].mxu0 %vm636_vm2, %v2692_v39 }
0x1703   : > { %2782 = vmatprep.mubr.f32.mxu0 %v3211_v10 }
0x1706   : > { %2992 = vmatmul.mubr.msk.f32.gmra.mrb[26].mxu0 %vm636_vm2, %v2693_v36 }
0x17d5   : > { %v2778_v40 = vpop.f32.mrb[24].mxu0 }
0x17d6   : > { %v2779_v44 = vadd.f32 %v2778_v40, %v2699_v38  ;;  %v2780_v41 = vpop.f32.mrb[25].mxu0 }
0x17d7   : > { %v2781_v42 = vadd.f32 %v2780_v41, %v2699_v38 }
0x17d8   : > { %v2993_v43 = vmul.f32 -1.442695, %v2779_v44 }
0x17d9   : > { %v2994_v17 = vmul.f32 -1.442695, %v2781_v42  ;;  %v2784_v18 = vpop.f32.mrb[26].mxu0 }
0x17da   : > { %3131 = vpow2.f32 %v2993_v43  ;;  %v2785_v19 = vadd.f32 %v2784_v18, %v2704_v16  ;;  %v2786_v20 = vpop.f32.mrb[27].mxu0 }
0x17db   : > { %3133 = vpow2.f32 %v2994_v17  ;;  %v2787_v10 = vadd.f32 %v2786_v20, %v2704_v16 }
0x17dc   : > { %v2995_v21 = vmul.f32 -1.442695, %v2785_v19 }
0x17dd   : > { %v2996_v22 = vmul.f32 -1.442695, %v2787_v10 }
0x17de   : > { %3135 = vpow2.f32 %v2995_v21 }
0x17df   : > { %3137 = vpow2.f32 %v2996_v22 }
0x17e4   : > { %v3132_v23 = vpop.eup %3131 }
0x17e5   : > { %v3134_v24 = vpop.eup %3133  ;;  %v2801_v25 = vadd.f32 1.0, %v3132_v23 }
0x17e6   : > { %v2802_v26 = vadd.f32 1.0, %v3134_v24 }
0x17e7   : > { %3139 = vrcp.f32 %v2801_v25 }
0x17e8   : > { %v3136_v27 = vpop.eup %3135  ;;  %3141 = vrcp.f32 %v2802_v26 }
0x17e9   : > { %v3138_v28 = vpop.eup %3137  ;;  %v2803_v29 = vadd.f32 1.0, %v3136_v27 }
0x17ea   : > { %v2804_v48 = vadd.f32 1.0, %v3138_v28 }
0x17eb   : > { %3143 = vrcp.f32 %v2803_v29 }
0x17ec   : > { %3145 = vrcp.f32 %v2804_v48 }
0x17f1   : > { %v3140_v30 = vpop.eup %3139 }
0x17f2   : > { %v3142_v31 = vpop.eup %3141  ;;  %2813 = vst [vmem:[%s422_s27] sm:$0xff] %v3140_v30 }
0x17f3   : > { %2814 = vst [vmem:[%s422_s27 + $0x8] sm:$0xff] %v3142_v31 }
0x17f5   : > { %v3144_v32 = vpop.eup %3143 }
0x17f6   : > { %v3146_v49 = vpop.eup %3145  ;;  %2815 = vst [vmem:[%s422_s27 + $0x10] sm:$0x1] %v3144_v32 }
0x17f7   : > { %2816 = vst [vmem:[%s422_s27 + $0x18] sm:$0x1] %v3146_v49 }
0x17f8   : > { %3160 = shalt.err (!%p3157_p5)
}
0x17f9   : > { %s3161_s20 = scalar_lea.hbm %s3721_s29, 512  ;;  %s3165_s23 = scalar_lea.hbm %s3778_s11, 1024 }
0x17fa   : > { %p3162_p7 = scmp.ne.s32.totalorder %s3721_s29, %s3161_s20  ;;  %p3166_p12 = scmp.lt.u32.totalorder %s3721_s29, %s3778_s11 }
0x17fb   : > { %p3167_p13 = scmp.lt.u32.totalorder %s3165_s23, %s3161_s20  ;;  %p3169_p1 = scmp.lt.u32.totalorder %s3161_s20, %s3721_s29 }
0x17fc   : > { %p3163_p10 = pnand %p3162_p7, %p3318_p6 }
0x17fd   : > { %p3168_p0 = por %p3167_p13, %p3166_p12 }
0x17fe   : > { %p3164_p11 = pneg %p3163_p10 }
0x17ff   : > { %p3170_p2 = por %p3169_p1, %p3168_p0 }
0x1801   : > { %p3171_p3 = pnand %p3170_p2, %p3164_p11 }
0x1803   : > { %3174 = shalt.err (!%p3171_p3)
}
0x1804   : > { %s3217_s28 = smov 256   ;;  %s3218_s30 = smov 512  }
0x1805   : > { %s3219_s12 = smov 16  }
0x1806   : > { %3050 = dma.vmem_to_hbm [thread:$0]  (%p3318_p6), %s3723_s14, 512, %s3721_s29, %s2818_s19, %s3217_s28, %s3218_s30, %s3219_s12  }
0x1807 PF: > { %s2846_s22 = sand.u32 1, %s3197_s15   ;;  %p3053_p4 = pnand %p2901_p9, %p3322_p8 }
0x1808   : > { %s2847_s20 = scalar_lea.sflag [#allocation4], %s2846_s22 }
0x1809   : > { %3192 = dma.done.wait (!%p3053_p4), %s2847_s20, 512  }
0x180a   : > { %3194 = vsyncadd (!%p3053_p4), %s2847_s20, 4294966784  ;;  %p21_p5 = scmp.ge.s32.totalorder %s3303_s21, 4   ;;  %s3781_s15 = smov %s3201_s16 }
0x180b   : > { %s3782_s16 = smov %s3205_s17  ;;  %s3783_s17 = smov %s3316_s24 }
0x180c   : > { %s3784_s18 = smov %s3303_s21  ;;  %23 = sbr.rel (!%p21_p5) target bundleno = 3 (0x3), region = 167 }
0x1813   :  { %2852 = vsyncpa [#allocation4], 1 }
0x1814   :  { %2854 = vsyncpa [#allocation4 + $0x1], 1 }

</bundles_post_ra>
